<compile_context>
chip_gen: v7x
topology: tpu7x:2x2x1
jax: 0.10.0
libtpu: 0.0.40
codegen_flags: <defaults>
</compile_context>

<pallas_src>
import functools
import math

import jax
import jax.numpy as jnp
import numpy as np
from jax.experimental import pallas as pl
from jax.experimental.pallas import tpu as pltpu


# ----------------------------------------------------------------------------
# Layout helpers (run in the wrapper, trace-time / tiny tensors, fused by XLA)
# ----------------------------------------------------------------------------
def _pad_width(min_width, channels):
    """Smallest padded width >= min_width with width*channels % 128 == 0."""
    g = 128 // math.gcd(128, channels)
    return ((min_width + g - 1) // g) * g


def _width_unrolled_weights(w_oihw, wp_in, w_valid, out_off, w_out_total):
    """Unroll a 3x3 conv weight over the padded width so one kernel-row shift
    of the lane-packed activation (rows, wp_in*K) becomes a single lane-dense
    matmul producing (rows, w_out_total*Cout).

    Result shape (3, wp_in*K, w_out_total*Cout);
    [dh, wi*K + k, (wo+out_off)*Cout + co] = W[co, k, dh, wi-wo] for 0<=wi-wo<3.
    """
    cout, k, kh, kw = w_oihw.shape
    wc = jnp.transpose(w_oihw, (2, 3, 1, 0))                 # (3, 3, K, Cout)
    wi = jnp.arange(wp_in)[:, None]
    wo = jnp.arange(w_valid)[None, :]
    d = wi - wo                                              # (wp_in, w_valid)
    valid = ((d >= 0) & (d < kw)).astype(w_oihw.dtype)
    t = wc[:, jnp.clip(d, 0, kw - 1)]                        # (3, wp_in, w_valid, K, Cout)
    t = t * valid[None, :, :, None, None]
    t = jnp.transpose(t, (0, 1, 3, 2, 4)).reshape(kh, wp_in * k, w_valid * cout)
    out = jnp.zeros((kh, wp_in * k, w_out_total * cout), w_oihw.dtype)
    return out.at[:, :, out_off * cout:(out_off + w_valid) * cout].set(t)


def _lane_vec(vec_c, w_valid, out_off, w_total):
    """Tile a per-channel vector over the valid pixel lanes of a (1, w_total*C)
    row.  Lanes belonging to padding pixels are zero (doubles as a pad mask)."""
    c = vec_c.shape[0]
    row = jnp.zeros((w_total, c), vec_c.dtype)
    row = row.at[out_off:out_off + w_valid, :].set(jnp.broadcast_to(vec_c, (w_valid, c)))
    return row.reshape(1, w_total * c)


def _prepare_cat(x_nhwc, skip_nhwc, up_w, up_b, wp1, hp):
    """Fused ConvTranspose2d(k=2,s=2) + F.interpolate(nearest) + concat + pad.
    Produces conv1's input directly in the lane-packed padded layout
    (N, hp, wp1*(2*Cout)) without materializing the (2h, 2w) upsample."""
    n, h, w, cin = x_nhwc.shape
    _, hs, ws, _ = skip_nhwc.shape
    # F.interpolate nearest: src = floor(dst * in / out) on the (2h, 2w) grid.
    si = (jnp.arange(hs) * (2 * h)) // hs
    sj = (jnp.arange(ws) * (2 * w)) // ws
    ri, ai = si // 2, si % 2                       # input row / 2x2 tap row
    rj, bj = sj // 2, sj % 2
    xg = x_nhwc[:, ri][:, :, rj]                   # (N, Hs, Ws, Cin) dest-sized gather
    w4 = jnp.transpose(up_w, (2, 3, 0, 1)).reshape(4, cin, -1)   # tap t = a*2+b
    up_all = jnp.einsum("nijc,tco->nijto", xg, w4)
    tap = ai[:, None] * 2 + bj[None, :]
    onehot = jax.nn.one_hot(tap, 4, dtype=xg.dtype)              # (Hs, Ws, 4)
    up = jnp.einsum("nijto,ijt->nijo", up_all, onehot) + up_b
    cat = jnp.concatenate([up, skip_nhwc], axis=-1)              # (N, Hs, Ws, 2*Cout)
    cat = jnp.pad(cat, ((0, 0), (1, hp - hs - 1), (1, wp1 - ws - 1), (0, 0)))
    return cat.reshape(n, hp, wp1 * cat.shape[-1])


# ----------------------------------------------------------------------------
# Single fused Pallas kernel: conv1 + BN1 + ReLU1 + conv2 + BN2 + ReLU2
# ----------------------------------------------------------------------------
def _decoder_fused_kernel(cat_ref, wu1_ref, wu2_ref, b1_ref, g1_ref, be1_ref,
                          b2_ref, g2_ref, be2_ref, red_ref, out_ref,
                          *, n, h, hp, count, eps):
    l1 = out_ref.shape[-1]                         # wp2 * Cout (multiple of 128)
    inv_count = 1.0 / count

    def conv3(lhs_bf16, wu_ref, brow):
        """3x3 conv as 3 lane-dense MXU matmuls over all N*hp rows (batch folded
        into M), shift-accumulated on the output rows.  bf16 operands, f32 acc."""
        f0 = jnp.dot(lhs_bf16, wu_ref[0],
                     preferred_element_type=jnp.float32).reshape(n, hp, l1)
        f1 = jnp.dot(lhs_bf16, wu_ref[1],
                     preferred_element_type=jnp.float32).reshape(n, hp, l1)
        f2 = jnp.dot(lhs_bf16, wu_ref[2],
                     preferred_element_type=jnp.float32).reshape(n, hp, l1)
        return f0[:, 0:h] + f1[:, 1:h + 1] + f2[:, 2:h + 2] + brow

    def bn_scale_shift(y, grow, berow):
        """Batch-norm (training-time batch stats) fused in-kernel.  The
        per-channel reduction over width lanes uses a small channel-mask matmul
        (red_ref) so no cross-lane reshape is needed; pad lanes stay exactly
        zero because grow/berow are zero there."""
        s = jnp.sum(jnp.sum(y, axis=0), axis=0, keepdims=True)          # (1, L)
        q = jnp.sum(jnp.sum(y * y, axis=0), axis=0, keepdims=True)      # (1, L)
        pc = jnp.dot(jnp.concatenate([s, q], axis=0), red_ref[...],
                     preferred_element_type=jnp.float32)                # (2, L)
        mean = pc[0:1] * inv_count
        var = pc[1:2] * inv_count - mean * mean                         # biased (PyTorch train)
        scale = grow * jax.lax.rsqrt(var + eps)
        shift = berow - mean * scale
        return scale, shift

    # ---- conv1 + BN1 + ReLU1 ------------------------------------------------
    y1 = conv3(cat_ref[...], wu1_ref, b1_ref[...])              # (N, H, L1) f32
    sc1, sh1 = bn_scale_shift(y1, g1_ref[...], be1_ref[...])
    a1 = jnp.maximum(y1 * sc1 + sh1, 0.0)

    # Re-insert the zero top/bottom pad rows for conv2 (width pad lanes are
    # already zero because sc1/sh1 are zero on pad lanes).
    a1f = jnp.concatenate(
        [jnp.zeros((n, 1, l1), jnp.float32), a1,
         jnp.zeros((n, hp - h - 1, l1), jnp.float32)], axis=1)   # (N, hp, L1)

    # ---- conv2 + BN2 + ReLU2 ------------------------------------------------
    y2 = conv3(a1f.reshape(n * hp, l1).astype(jnp.bfloat16), wu2_ref, b2_ref[...])
    sc2, sh2 = bn_scale_shift(y2, g2_ref[...], be2_ref[...])
    o = jnp.maximum(y2 * sc2 + sh2, 0.0)                        # (N, H, L1)

    # Direct sliced stores (no concat temp); zero the padding rows so the
    # output buffer is fully defined.
    out_ref[:, 0:h, :] = o
    out_ref[:, h:hp, :] = jnp.zeros((n, hp - h, l1), jnp.float32)


def _decoder_fused(cat2d, wu1, wu2, b1, g1, be1, b2, g2, be2, red,
                   n, h, hp, count, eps):
    l1 = wu1.shape[-1]
    kern = functools.partial(_decoder_fused_kernel, n=n, h=h, hp=hp,
                             count=count, eps=eps)

    def vec_spec(a):
        return pl.BlockSpec(a.shape, lambda i: (0, 0))

    return pl.pallas_call(
        kern,
        out_shape=jax.ShapeDtypeStruct((n, hp, l1), jnp.float32),
        grid=(1,),
        in_specs=[
            pl.BlockSpec(cat2d.shape, lambda i: (0, 0)),
            pl.BlockSpec(wu1.shape, lambda i: (0, 0, 0)),
            pl.BlockSpec(wu2.shape, lambda i: (0, 0, 0)),
            vec_spec(b1), vec_spec(g1), vec_spec(be1),
            vec_spec(b2), vec_spec(g2), vec_spec(be2),
            vec_spec(red),
        ],
        out_specs=pl.BlockSpec((n, hp, l1), lambda i: (0, 0, 0)),
        compiler_params=pltpu.CompilerParams(
            dimension_semantics=("arbitrary",),
            vmem_limit_bytes=32 * 1024 * 1024),
    )(cat2d, wu1, wu2, b1, g1, be1, b2, g2, be2, red)


# ----------------------------------------------------------------------------
# Full decoder forward
# ----------------------------------------------------------------------------
def decoder_forward(params, inputs_nchw, skip_nchw, eps=1e-5):
    x = jnp.transpose(inputs_nchw, (0, 2, 3, 1)).astype(jnp.float32)   # NHWC
    skip = jnp.transpose(skip_nchw, (0, 2, 3, 1)).astype(jnp.float32)  # NHWC
    n, hs, ws, cout = skip.shape
    cc = 2 * cout
    wp1 = _pad_width(ws + 2, cc)        # padded width of the concat input
    wp2 = _pad_width(ws + 2, cout)      # padded width of conv outputs
    hp = ((hs + 2 + 7) // 8) * 8        # row count padded to a multiple of 8
    l1 = wp2 * cout

    # Fused ConvTranspose + nearest-interp + concat + pad -> conv1 input,
    # flattened to (N*hp, wp1*Cc) and cast to bf16 (MXU operand, half the DMA).
    cat = _prepare_cat(x, skip, params["up_w"], params["up_b"], wp1, hp)
    cat2d = cat.reshape(n * hp, wp1 * cc).astype(jnp.bfloat16)

    # Width-unrolled conv weights (bf16 MXU operands) and lane-packed
    # bias / gamma / beta vectors (zero on pad lanes -> double as pad masks).
    wu1 = _width_unrolled_weights(params["c1_w"], wp1, ws, 1, wp2).astype(jnp.bfloat16)
    wu2 = _width_unrolled_weights(params["c2_w"], wp2, ws, 0, wp2).astype(jnp.bfloat16)
    b1 = _lane_vec(params["c1_b"], ws, 1, wp2)
    g1 = _lane_vec(params["bn1_g"], ws, 1, wp2)
    be1 = _lane_vec(params["bn1_b"], ws, 1, wp2)
    b2 = _lane_vec(params["c2_b"], ws, 0, wp2)
    g2 = _lane_vec(params["bn2_g"], ws, 0, wp2)
    be2 = _lane_vec(params["bn2_b"], ws, 0, wp2)

    # Channel-mask reduce matrix: red[i, j] = 1 iff lanes i, j hold the same
    # channel.  stats_row @ red = per-channel sums broadcast back to all lanes.
    ch = jnp.arange(l1) % cout
    red = (ch[:, None] == ch[None, :]).astype(jnp.float32)

    y = _decoder_fused(cat2d, wu1, wu2, b1, g1, be1, b2, g2, be2, red,
                       n, hs, hp, n * hs * ws, eps)

    out = y.reshape(n, hp, wp2, cout)[:, :hs, :ws, :]       # drop row/width pad
    return jnp.transpose(out, (0, 3, 1, 2))                 # back to NCHW


# ----------------------------------------------------------------------------
# Deterministic parameter init (shapes follow the PyTorch module __init__).
# ----------------------------------------------------------------------------
def init_params(key, in_c, out_c):
    ks = jax.random.split(key, 10)
    s = 0.1
    return {
        "up_w": s * jax.random.normal(ks[0], (in_c, out_c, 2, 2), jnp.float32),
        "up_b": s * jax.random.normal(ks[1], (out_c,), jnp.float32),
        "c1_w": s * jax.random.normal(ks[2], (out_c, 2 * out_c, 3, 3), jnp.float32),
        "c1_b": s * jax.random.normal(ks[3], (out_c,), jnp.float32),
        "bn1_g": 1.0 + s * jax.random.normal(ks[4], (out_c,), jnp.float32),
        "bn1_b": s * jax.random.normal(ks[5], (out_c,), jnp.float32),
        "c2_w": s * jax.random.normal(ks[6], (out_c, out_c, 3, 3), jnp.float32),
        "c2_b": s * jax.random.normal(ks[7], (out_c,), jnp.float32),
        "bn2_g": 1.0 + s * jax.random.normal(ks[8], (out_c,), jnp.float32),
        "bn2_b": s * jax.random.normal(ks[9], (out_c,), jnp.float32),
    }


# ----------------------------------------------------------------------------
# Independent pure-JAX reference (NCHW, lax.conv) mirroring PyTorch semantics.
# ----------------------------------------------------------------------------
def reference_forward(params, inputs_nchw, skip_nchw):
    n, _, h, w = inputs_nchw.shape
    cout = params["up_w"].shape[1]
    hs, ws = skip_nchw.shape[2:]

    up = jnp.einsum("nchw,cokl->nohwkl", inputs_nchw, params["up_w"])
    up = up.transpose(0, 1, 2, 4, 3, 5).reshape(n, cout, 2 * h, 2 * w)
    up = up + params["up_b"][None, :, None, None]
    ih = (jnp.arange(hs) * (2 * h)) // hs
    iw = (jnp.arange(ws) * (2 * w)) // ws
    up = up[:, :, ih][:, :, :, iw]
    x = jnp.concatenate([up, skip_nchw], axis=1)

    def conv_bn_relu(x, wgt, b, g, beta):
        y = jax.lax.conv_general_dilated(
            x, wgt, window_strides=(1, 1), padding=((1, 1), (1, 1)),
            dimension_numbers=("NCHW", "OIHW", "NCHW"))
        y = y + b[None, :, None, None]
        mean = y.mean(axis=(0, 2, 3), keepdims=True)
        var = ((y - mean) ** 2).mean(axis=(0, 2, 3), keepdims=True)
        y = (y - mean) * jax.lax.rsqrt(var + 1e-5)
        y = y * g[None, :, None, None] + beta[None, :, None, None]
        return jnp.maximum(y, 0.0)

    x = conv_bn_relu(x, params["c1_w"], params["c1_b"], params["bn1_g"], params["bn1_b"])
    x = conv_bn_relu(x, params["c2_w"], params["c2_b"], params["bn2_g"], params["bn2_b"])
    return x


if __name__ == "__main__":
    key = jax.random.PRNGKey(0)
    k_in, k_skip, k_p = jax.random.split(key, 3)

    in_c, out_c, n_batch = 8, 4, 2
    inputs = jax.random.normal(k_in, (n_batch, in_c, 8, 8), jnp.float32)        # NCHW
    skip = jax.random.normal(k_skip, (n_batch, out_c, 18, 18), jnp.float32)     # NCHW
    params = init_params(k_p, in_c, out_c)

    fwd = jax.jit(decoder_forward)
    out = jax.block_until_ready(fwd(params, inputs, skip))
    assert out.shape == (n_batch, out_c, 18, 18), out.shape

    ref = jax.block_until_ready(reference_forward(params, inputs, skip))
    # bf16 MXU operands (f32 accumulation / BN stats) => loosened tolerance.
    if not np.allclose(np.asarray(out), np.asarray(ref), rtol=3e-2, atol=4e-2):
        err = float(np.max(np.abs(np.asarray(out) - np.asarray(ref))))
        raise AssertionError(f"Pallas decoder output does not match reference (max abs err {err})")

    print("KERNEL_OK")
</pallas_src>

<mosaic_0001>
module attributes {stable_mosaic.version = 11 : i64} {
  func.func @_decoder_fused_kernel(%arg0: i32, %arg1: memref<48x256xbf16, #tpu.memory_space<vmem>>, %arg2: memref<3x256x128xbf16, #tpu.memory_space<vmem>>, %arg3: memref<3x128x128xbf16, #tpu.memory_space<vmem>>, %arg4: memref<1x128xf32, #tpu.memory_space<vmem>>, %arg5: memref<1x128xf32, #tpu.memory_space<vmem>>, %arg6: memref<1x128xf32, #tpu.memory_space<vmem>>, %arg7: memref<1x128xf32, #tpu.memory_space<vmem>>, %arg8: memref<1x128xf32, #tpu.memory_space<vmem>>, %arg9: memref<1x128xf32, #tpu.memory_space<vmem>>, %arg10: memref<128x128xf32, #tpu.memory_space<vmem>>, %arg11: memref<2x24x128xf32, #tpu.memory_space<vmem>>) attributes {dimension_semantics = [#tpu.dimension_semantics<arbitrary>], iteration_bounds = array<i64: 1>, scalar_prefetch = 0 : i64, scratch_operands = 0 : i64, tpu.core_type = #tpu.core_type<tc>, window_params = [{pipeline_mode = #tpu.pipeline_mode<synchronous>, transform_indices = @transform_0, window_bounds = array<i64: 48, 256>}, {pipeline_mode = #tpu.pipeline_mode<synchronous>, transform_indices = @transform_1, window_bounds = array<i64: 3, 256, 128>}, {pipeline_mode = #tpu.pipeline_mode<synchronous>, transform_indices = @transform_2, window_bounds = array<i64: 3, 128, 128>}, {pipeline_mode = #tpu.pipeline_mode<synchronous>, transform_indices = @transform_3, window_bounds = array<i64: 1, 128>}, {pipeline_mode = #tpu.pipeline_mode<synchronous>, transform_indices = @transform_4, window_bounds = array<i64: 1, 128>}, {pipeline_mode = #tpu.pipeline_mode<synchronous>, transform_indices = @transform_5, window_bounds = array<i64: 1, 128>}, {pipeline_mode = #tpu.pipeline_mode<synchronous>, transform_indices = @transform_6, window_bounds = array<i64: 1, 128>}, {pipeline_mode = #tpu.pipeline_mode<synchronous>, transform_indices = @transform_7, window_bounds = array<i64: 1, 128>}, {pipeline_mode = #tpu.pipeline_mode<synchronous>, transform_indices = @transform_8, window_bounds = array<i64: 1, 128>}, {pipeline_mode = #tpu.pipeline_mode<synchronous>, transform_indices = @transform_9, window_bounds = array<i64: 128, 128>}, {pipeline_mode = #tpu.pipeline_mode<synchronous>, transform_indices = @transform_10, window_bounds = array<i64: 2, 24, 128>}]} {
    %c0 = arith.constant 0 : index
    %c0_0 = arith.constant 0 : index
    %0 = vector.load %arg1[%c0, %c0_0] : memref<48x256xbf16, #tpu.memory_space<vmem>>, vector<48x256xbf16>
    %c0_1 = arith.constant 0 : index
    %c0_2 = arith.constant 0 : index
    %1 = vector.load %arg4[%c0_1, %c0_2] : memref<1x128xf32, #tpu.memory_space<vmem>>, vector<1x128xf32>
    %c0_3 = arith.constant 0 : index
    %c0_4 = arith.constant 0 : index
    %c0_5 = arith.constant 0 : index
    %2 = vector.load %arg2[%c0_3, %c0_4, %c0_5] : memref<3x256x128xbf16, #tpu.memory_space<vmem>>, vector<1x256x128xbf16>
    %3 = vector.shape_cast %2 : vector<1x256x128xbf16> to vector<256x128xbf16>
    %cst = arith.constant dense<0.000000e+00> : vector<48x128xf32>
    %4 = tpu.matmul %0, %3, %cst {dimension_numbers = #tpu.dot_dimension_numbers<[1], [0], [0], [1], [0, 0, 1, 1], [], []>} : vector<48x256xbf16>, vector<256x128xbf16>, vector<48x128xf32> -> vector<48x128xf32>
    %5 = vector.shape_cast %4 : vector<48x128xf32> to vector<2x24x128xf32>
    %c1 = arith.constant 1 : index
    %c0_6 = arith.constant 0 : index
    %c0_7 = arith.constant 0 : index
    %6 = vector.load %arg2[%c1, %c0_6, %c0_7] : memref<3x256x128xbf16, #tpu.memory_space<vmem>>, vector<1x256x128xbf16>
    %7 = vector.shape_cast %6 : vector<1x256x128xbf16> to vector<256x128xbf16>
    %cst_8 = arith.constant dense<0.000000e+00> : vector<48x128xf32>
    %8 = tpu.matmul %0, %7, %cst_8 {dimension_numbers = #tpu.dot_dimension_numbers<[1], [0], [0], [1], [0, 0, 1, 1], [], []>} : vector<48x256xbf16>, vector<256x128xbf16>, vector<48x128xf32> -> vector<48x128xf32>
    %9 = vector.shape_cast %8 : vector<48x128xf32> to vector<2x24x128xf32>
    %c2 = arith.constant 2 : index
    %c0_9 = arith.constant 0 : index
    %c0_10 = arith.constant 0 : index
    %10 = vector.load %arg2[%c2, %c0_9, %c0_10] : memref<3x256x128xbf16, #tpu.memory_space<vmem>>, vector<1x256x128xbf16>
    %11 = vector.shape_cast %10 : vector<1x256x128xbf16> to vector<256x128xbf16>
    %cst_11 = arith.constant dense<0.000000e+00> : vector<48x128xf32>
    %12 = tpu.matmul %0, %11, %cst_11 {dimension_numbers = #tpu.dot_dimension_numbers<[1], [0], [0], [1], [0, 0, 1, 1], [], []>} : vector<48x256xbf16>, vector<256x128xbf16>, vector<48x128xf32> -> vector<48x128xf32>
    %13 = vector.shape_cast %12 : vector<48x128xf32> to vector<2x24x128xf32>
    %14 = vector.extract_strided_slice %5 {offsets = [0, 0, 0], sizes = [2, 18, 128], strides = [1, 1, 1]} : vector<2x24x128xf32> to vector<2x18x128xf32>
    %15 = vector.extract_strided_slice %9 {offsets = [0, 1, 0], sizes = [2, 18, 128], strides = [1, 1, 1]} : vector<2x24x128xf32> to vector<2x18x128xf32>
    %16 = arith.addf %14, %15 : vector<2x18x128xf32>
    %17 = vector.extract_strided_slice %13 {offsets = [0, 2, 0], sizes = [2, 18, 128], strides = [1, 1, 1]} : vector<2x24x128xf32> to vector<2x18x128xf32>
    %18 = arith.addf %16, %17 : vector<2x18x128xf32>
    %19 = vector.shape_cast %1 : vector<1x128xf32> to vector<1x1x128xf32>
    %20 = vector.broadcast %19 : vector<1x1x128xf32> to vector<2x18x128xf32>
    %21 = arith.addf %18, %20 : vector<2x18x128xf32>
    %c0_12 = arith.constant 0 : index
    %c0_13 = arith.constant 0 : index
    %22 = vector.load %arg5[%c0_12, %c0_13] : memref<1x128xf32, #tpu.memory_space<vmem>>, vector<1x128xf32>
    %c0_14 = arith.constant 0 : index
    %c0_15 = arith.constant 0 : index
    %23 = vector.load %arg6[%c0_14, %c0_15] : memref<1x128xf32, #tpu.memory_space<vmem>>, vector<1x128xf32>
    %cst_16 = arith.constant dense<0.000000e+00> : vector<18x128xf32>
    %24 = vector.multi_reduction <add>, %21, %cst_16 [0] : vector<2x18x128xf32> to vector<18x128xf32>
    %cst_17 = arith.constant dense<0.000000e+00> : vector<128xf32>
    %25 = vector.multi_reduction <add>, %24, %cst_17 [0] : vector<18x128xf32> to vector<128xf32>
    %26 = vector.shape_cast %25 : vector<128xf32> to vector<1x128xf32>
    %27 = arith.mulf %21, %21 : vector<2x18x128xf32>
    %cst_18 = arith.constant dense<0.000000e+00> : vector<18x128xf32>
    %28 = vector.multi_reduction <add>, %27, %cst_18 [0] : vector<2x18x128xf32> to vector<18x128xf32>
    %cst_19 = arith.constant dense<0.000000e+00> : vector<128xf32>
    %29 = vector.multi_reduction <add>, %28, %cst_19 [0] : vector<18x128xf32> to vector<128xf32>
    %30 = vector.shape_cast %29 : vector<128xf32> to vector<1x128xf32>
    %31 = tpu.concatenate %26, %30 in 0 : vector<1x128xf32>, vector<1x128xf32> -> vector<2x128xf32>
    %c0_20 = arith.constant 0 : index
    %c0_21 = arith.constant 0 : index
    %32 = vector.load %arg10[%c0_20, %c0_21] : memref<128x128xf32, #tpu.memory_space<vmem>>, vector<128x128xf32>
    %cst_22 = arith.constant dense<0.000000e+00> : vector<2x128xf32>
    %33 = tpu.matmul %31, %32, %cst_22 {dimension_numbers = #tpu.dot_dimension_numbers<[1], [0], [0], [1], [0, 0, 1, 1], [], []>} : vector<2x128xf32>, vector<128x128xf32>, vector<2x128xf32> -> vector<2x128xf32>
    %34 = vector.extract_strided_slice %33 {offsets = [0, 0], sizes = [1, 128], strides = [1, 1]} : vector<2x128xf32> to vector<1x128xf32>
    %cst_23 = arith.constant 0.00154320989 : f32
    %35 = vector.broadcast %cst_23 : f32 to vector<1x128xf32>
    %36 = arith.mulf %34, %35 : vector<1x128xf32>
    %37 = vector.extract_strided_slice %33 {offsets = [1, 0], sizes = [1, 128], strides = [1, 1]} : vector<2x128xf32> to vector<1x128xf32>
    %cst_24 = arith.constant 0.00154320989 : f32
    %38 = vector.broadcast %cst_24 : f32 to vector<1x128xf32>
    %39 = arith.mulf %37, %38 : vector<1x128xf32>
    %40 = arith.mulf %36, %36 : vector<1x128xf32>
    %41 = arith.subf %39, %40 : vector<1x128xf32>
    %cst_25 = arith.constant 9.99999974E-6 : f32
    %42 = vector.broadcast %cst_25 : f32 to vector<1x128xf32>
    %43 = arith.addf %41, %42 : vector<1x128xf32>
    %44 = math.rsqrt %43 : vector<1x128xf32>
    %45 = arith.mulf %22, %44 : vector<1x128xf32>
    %46 = arith.mulf %36, %45 : vector<1x128xf32>
    %47 = arith.subf %23, %46 : vector<1x128xf32>
    %48 = vector.shape_cast %45 : vector<1x128xf32> to vector<1x1x128xf32>
    %49 = vector.broadcast %48 : vector<1x1x128xf32> to vector<2x18x128xf32>
    %50 = arith.mulf %21, %49 : vector<2x18x128xf32>
    %51 = vector.shape_cast %47 : vector<1x128xf32> to vector<1x1x128xf32>
    %52 = vector.broadcast %51 : vector<1x1x128xf32> to vector<2x18x128xf32>
    %53 = arith.addf %50, %52 : vector<2x18x128xf32>
    %cst_26 = arith.constant 0.000000e+00 : f32
    %54 = vector.broadcast %cst_26 : f32 to vector<2x18x128xf32>
    %55 = arith.maximumf %53, %54 : vector<2x18x128xf32>
    %cst_27 = arith.constant 0.000000e+00 : f32
    %56 = vector.broadcast %cst_27 : f32 to vector<2x1x128xf32>
    %cst_28 = arith.constant 0.000000e+00 : f32
    %57 = vector.broadcast %cst_28 : f32 to vector<2x5x128xf32>
    %58 = tpu.concatenate %56, %55, %57 in 1 : vector<2x1x128xf32>, vector<2x18x128xf32>, vector<2x5x128xf32> -> vector<2x24x128xf32>
    %59 = vector.shape_cast %58 : vector<2x24x128xf32> to vector<48x128xf32>
    %60 = arith.truncf %59 : vector<48x128xf32> to vector<48x128xbf16>
    %c0_29 = arith.constant 0 : index
    %c0_30 = arith.constant 0 : index
    %61 = vector.load %arg7[%c0_29, %c0_30] : memref<1x128xf32, #tpu.memory_space<vmem>>, vector<1x128xf32>
    %c0_31 = arith.constant 0 : index
    %c0_32 = arith.constant 0 : index
    %c0_33 = arith.constant 0 : index
    %62 = vector.load %arg3[%c0_31, %c0_32, %c0_33] : memref<3x128x128xbf16, #tpu.memory_space<vmem>>, vector<1x128x128xbf16>
    %63 = vector.shape_cast %62 : vector<1x128x128xbf16> to vector<128x128xbf16>
    %cst_34 = arith.constant dense<0.000000e+00> : vector<48x128xf32>
    %64 = tpu.matmul %60, %63, %cst_34 {dimension_numbers = #tpu.dot_dimension_numbers<[1], [0], [0], [1], [0, 0, 1, 1], [], []>} : vector<48x128xbf16>, vector<128x128xbf16>, vector<48x128xf32> -> vector<48x128xf32>
    %65 = vector.shape_cast %64 : vector<48x128xf32> to vector<2x24x128xf32>
    %c1_35 = arith.constant 1 : index
    %c0_36 = arith.constant 0 : index
    %c0_37 = arith.constant 0 : index
    %66 = vector.load %arg3[%c1_35, %c0_36, %c0_37] : memref<3x128x128xbf16, #tpu.memory_space<vmem>>, vector<1x128x128xbf16>
    %67 = vector.shape_cast %66 : vector<1x128x128xbf16> to vector<128x128xbf16>
    %cst_38 = arith.constant dense<0.000000e+00> : vector<48x128xf32>
    %68 = tpu.matmul %60, %67, %cst_38 {dimension_numbers = #tpu.dot_dimension_numbers<[1], [0], [0], [1], [0, 0, 1, 1], [], []>} : vector<48x128xbf16>, vector<128x128xbf16>, vector<48x128xf32> -> vector<48x128xf32>
    %69 = vector.shape_cast %68 : vector<48x128xf32> to vector<2x24x128xf32>
    %c2_39 = arith.constant 2 : index
    %c0_40 = arith.constant 0 : index
    %c0_41 = arith.constant 0 : index
    %70 = vector.load %arg3[%c2_39, %c0_40, %c0_41] : memref<3x128x128xbf16, #tpu.memory_space<vmem>>, vector<1x128x128xbf16>
    %71 = vector.shape_cast %70 : vector<1x128x128xbf16> to vector<128x128xbf16>
    %cst_42 = arith.constant dense<0.000000e+00> : vector<48x128xf32>
    %72 = tpu.matmul %60, %71, %cst_42 {dimension_numbers = #tpu.dot_dimension_numbers<[1], [0], [0], [1], [0, 0, 1, 1], [], []>} : vector<48x128xbf16>, vector<128x128xbf16>, vector<48x128xf32> -> vector<48x128xf32>
    %73 = vector.shape_cast %72 : vector<48x128xf32> to vector<2x24x128xf32>
    %74 = vector.extract_strided_slice %65 {offsets = [0, 0, 0], sizes = [2, 18, 128], strides = [1, 1, 1]} : vector<2x24x128xf32> to vector<2x18x128xf32>
    %75 = vector.extract_strided_slice %69 {offsets = [0, 1, 0], sizes = [2, 18, 128], strides = [1, 1, 1]} : vector<2x24x128xf32> to vector<2x18x128xf32>
    %76 = arith.addf %74, %75 : vector<2x18x128xf32>
    %77 = vector.extract_strided_slice %73 {offsets = [0, 2, 0], sizes = [2, 18, 128], strides = [1, 1, 1]} : vector<2x24x128xf32> to vector<2x18x128xf32>
    %78 = arith.addf %76, %77 : vector<2x18x128xf32>
    %79 = vector.shape_cast %61 : vector<1x128xf32> to vector<1x1x128xf32>
    %80 = vector.broadcast %79 : vector<1x1x128xf32> to vector<2x18x128xf32>
    %81 = arith.addf %78, %80 : vector<2x18x128xf32>
    %c0_43 = arith.constant 0 : index
    %c0_44 = arith.constant 0 : index
    %82 = vector.load %arg8[%c0_43, %c0_44] : memref<1x128xf32, #tpu.memory_space<vmem>>, vector<1x128xf32>
    %c0_45 = arith.constant 0 : index
    %c0_46 = arith.constant 0 : index
    %83 = vector.load %arg9[%c0_45, %c0_46] : memref<1x128xf32, #tpu.memory_space<vmem>>, vector<1x128xf32>
    %cst_47 = arith.constant dense<0.000000e+00> : vector<18x128xf32>
    %84 = vector.multi_reduction <add>, %81, %cst_47 [0] : vector<2x18x128xf32> to vector<18x128xf32>
    %cst_48 = arith.constant dense<0.000000e+00> : vector<128xf32>
    %85 = vector.multi_reduction <add>, %84, %cst_48 [0] : vector<18x128xf32> to vector<128xf32>
    %86 = vector.shape_cast %85 : vector<128xf32> to vector<1x128xf32>
    %87 = arith.mulf %81, %81 : vector<2x18x128xf32>
    %cst_49 = arith.constant dense<0.000000e+00> : vector<18x128xf32>
    %88 = vector.multi_reduction <add>, %87, %cst_49 [0] : vector<2x18x128xf32> to vector<18x128xf32>
    %cst_50 = arith.constant dense<0.000000e+00> : vector<128xf32>
    %89 = vector.multi_reduction <add>, %88, %cst_50 [0] : vector<18x128xf32> to vector<128xf32>
    %90 = vector.shape_cast %89 : vector<128xf32> to vector<1x128xf32>
    %91 = tpu.concatenate %86, %90 in 0 : vector<1x128xf32>, vector<1x128xf32> -> vector<2x128xf32>
    %c0_51 = arith.constant 0 : index
    %c0_52 = arith.constant 0 : index
    %92 = vector.load %arg10[%c0_51, %c0_52] : memref<128x128xf32, #tpu.memory_space<vmem>>, vector<128x128xf32>
    %cst_53 = arith.constant dense<0.000000e+00> : vector<2x128xf32>
    %93 = tpu.matmul %91, %92, %cst_53 {dimension_numbers = #tpu.dot_dimension_numbers<[1], [0], [0], [1], [0, 0, 1, 1], [], []>} : vector<2x128xf32>, vector<128x128xf32>, vector<2x128xf32> -> vector<2x128xf32>
    %94 = vector.extract_strided_slice %93 {offsets = [0, 0], sizes = [1, 128], strides = [1, 1]} : vector<2x128xf32> to vector<1x128xf32>
    %cst_54 = arith.constant 0.00154320989 : f32
    %95 = vector.broadcast %cst_54 : f32 to vector<1x128xf32>
    %96 = arith.mulf %94, %95 : vector<1x128xf32>
    %97 = vector.extract_strided_slice %93 {offsets = [1, 0], sizes = [1, 128], strides = [1, 1]} : vector<2x128xf32> to vector<1x128xf32>
    %cst_55 = arith.constant 0.00154320989 : f32
    %98 = vector.broadcast %cst_55 : f32 to vector<1x128xf32>
    %99 = arith.mulf %97, %98 : vector<1x128xf32>
    %100 = arith.mulf %96, %96 : vector<1x128xf32>
    %101 = arith.subf %99, %100 : vector<1x128xf32>
    %cst_56 = arith.constant 9.99999974E-6 : f32
    %102 = vector.broadcast %cst_56 : f32 to vector<1x128xf32>
    %103 = arith.addf %101, %102 : vector<1x128xf32>
    %104 = math.rsqrt %103 : vector<1x128xf32>
    %105 = arith.mulf %82, %104 : vector<1x128xf32>
    %106 = arith.mulf %96, %105 : vector<1x128xf32>
    %107 = arith.subf %83, %106 : vector<1x128xf32>
    %108 = vector.shape_cast %105 : vector<1x128xf32> to vector<1x1x128xf32>
    %109 = vector.broadcast %108 : vector<1x1x128xf32> to vector<2x18x128xf32>
    %110 = arith.mulf %81, %109 : vector<2x18x128xf32>
    %111 = vector.shape_cast %107 : vector<1x128xf32> to vector<1x1x128xf32>
    %112 = vector.broadcast %111 : vector<1x1x128xf32> to vector<2x18x128xf32>
    %113 = arith.addf %110, %112 : vector<2x18x128xf32>
    %cst_57 = arith.constant 0.000000e+00 : f32
    %114 = vector.broadcast %cst_57 : f32 to vector<2x18x128xf32>
    %115 = arith.maximumf %113, %114 : vector<2x18x128xf32>
    %c0_58 = arith.constant 0 : index
    %c0_59 = arith.constant 0 : index
    %c0_60 = arith.constant 0 : index
    %116 = vector.load %arg11[%c0_58, %c0_59, %c0_60] : memref<2x24x128xf32, #tpu.memory_space<vmem>>, vector<2x18x128xf32>
    tpu.vector_store %arg11[%c0_58, %c0_59, %c0_60], %115 {strides = array<i32>} : memref<2x24x128xf32, #tpu.memory_space<vmem>>, vector<2x18x128xf32>,
    %cst_61 = arith.constant 0.000000e+00 : f32
    %117 = vector.broadcast %cst_61 : f32 to vector<2x6x128xf32>
    %c0_62 = arith.constant 0 : index
    %c18 = arith.constant 18 : index
    %c0_63 = arith.constant 0 : index
    %118 = vector.load %arg11[%c0_62, %c18, %c0_63] : memref<2x24x128xf32, #tpu.memory_space<vmem>>, vector<2x6x128xf32>
    tpu.vector_store %arg11[%c0_62, %c18, %c0_63], %117 {strides = array<i32>} : memref<2x24x128xf32, #tpu.memory_space<vmem>>, vector<2x6x128xf32>,
    return
  }
  func.func @transform_0(%arg0: i32) -> (i32, i32) {
    %c0_i32 = arith.constant 0 : i32
    %c0_i32_0 = arith.constant 0 : i32
    %c0_i32_1 = arith.constant 0 : i32
    return %c0_i32, %c0_i32_0 : i32, i32
  }
  func.func @transform_1(%arg0: i32) -> (i32, i32, i32) {
    %c0_i32 = arith.constant 0 : i32
    %c0_i32_0 = arith.constant 0 : i32
    %c0_i32_1 = arith.constant 0 : i32
    %c0_i32_2 = arith.constant 0 : i32
    return %c0_i32, %c0_i32_0, %c0_i32_1 : i32, i32, i32
  }
  func.func @transform_2(%arg0: i32) -> (i32, i32, i32) {
    %c0_i32 = arith.constant 0 : i32
    %c0_i32_0 = arith.constant 0 : i32
    %c0_i32_1 = arith.constant 0 : i32
    %c0_i32_2 = arith.constant 0 : i32
    return %c0_i32, %c0_i32_0, %c0_i32_1 : i32, i32, i32
  }
  func.func @transform_3(%arg0: i32) -> (i32, i32) {
    %c0_i32 = arith.constant 0 : i32
    %c0_i32_0 = arith.constant 0 : i32
    %c0_i32_1 = arith.constant 0 : i32
    return %c0_i32, %c0_i32_0 : i32, i32
  }
  func.func @transform_4(%arg0: i32) -> (i32, i32) {
    %c0_i32 = arith.constant 0 : i32
    %c0_i32_0 = arith.constant 0 : i32
    %c0_i32_1 = arith.constant 0 : i32
    return %c0_i32, %c0_i32_0 : i32, i32
  }
  func.func @transform_5(%arg0: i32) -> (i32, i32) {
    %c0_i32 = arith.constant 0 : i32
    %c0_i32_0 = arith.constant 0 : i32
    %c0_i32_1 = arith.constant 0 : i32
    return %c0_i32, %c0_i32_0 : i32, i32
  }
  func.func @transform_6(%arg0: i32) -> (i32, i32) {
    %c0_i32 = arith.constant 0 : i32
    %c0_i32_0 = arith.constant 0 : i32
    %c0_i32_1 = arith.constant 0 : i32
    return %c0_i32, %c0_i32_0 : i32, i32
  }
  func.func @transform_7(%arg0: i32) -> (i32, i32) {
    %c0_i32 = arith.constant 0 : i32
    %c0_i32_0 = arith.constant 0 : i32
    %c0_i32_1 = arith.constant 0 : i32
    return %c0_i32, %c0_i32_0 : i32, i32
  }
  func.func @transform_8(%arg0: i32) -> (i32, i32) {
    %c0_i32 = arith.constant 0 : i32
    %c0_i32_0 = arith.constant 0 : i32
    %c0_i32_1 = arith.constant 0 : i32
    return %c0_i32, %c0_i32_0 : i32, i32
  }
  func.func @transform_9(%arg0: i32) -> (i32, i32) {
    %c0_i32 = arith.constant 0 : i32
    %c0_i32_0 = arith.constant 0 : i32
    %c0_i32_1 = arith.constant 0 : i32
    return %c0_i32, %c0_i32_0 : i32, i32
  }
  func.func @transform_10(%arg0: i32) -> (i32, i32, i32) {
    %c0_i32 = arith.constant 0 : i32
    %c0_i32_0 = arith.constant 0 : i32
    %c0_i32_1 = arith.constant 0 : i32
    %c0_i32_2 = arith.constant 0 : i32
    return %c0_i32, %c0_i32_0, %c0_i32_1 : i32, i32, i32
  }
}

</mosaic_0001>

<bundles_post_ra>
// kernel: decoder_forward.1
= control target key start
LH: loop header
LB: loop body
LE: loop exit
PB: predicated region body
PF: predicated region fallthrough
CT: control target
= control target key end

     0   :  { %v2194_v57 = vmov 0.0|0.0   ;;  %vm2195_vm0 = vmmov 0   ;;  %vm636_vm1 = vcmask 1046528   ;;  %vm665_vm2 = vcmask 1045504   ;;  %s2834_s1 = inlined_call_operand.vmem [shape: bf16[3,256,128], index: 1, kind: input, shape index: {}]   ;;  %s2835_s0 = inlined_call_operand.vmem [shape: bf16[48,256], index: 0, kind: input, shape index: {}]   ;;  %s2836_s9 = inlined_call_operand.vmem [shape: f32[128,128], index: 9, kind: input, shape index: {}]   ;;  %s2837_s3 = inlined_call_operand.vmem [shape: f32[1,128], index: 3, kind: input, shape index: {}]   ;;  %s2838_s2 = inlined_call_operand.vmem [shape: bf16[3,128,128], index: 2, kind: input, shape index: {}]   ;;  %s2839_s4 = inlined_call_operand.vmem [shape: f32[1,128], index: 4, kind: input, shape index: {}]   ;;  %s2840_s5 = inlined_call_operand.vmem [shape: f32[1,128], index: 5, kind: input, shape index: {}]   ;;  %s2841_s10 = inlined_call_operand.vmem [shape: f32[2,24,128], index: 10, kind: output, shape index: {}]   ;;  %s2842_s6 = inlined_call_operand.vmem [shape: f32[1,128], index: 6, kind: input, shape index: {}]   ;;  %s2843_s7 = inlined_call_operand.vmem [shape: f32[1,128], index: 7, kind: input, shape index: {}]   ;;  %s2844_s8 = inlined_call_operand.vmem [shape: f32[1,128], index: 8, kind: input, shape index: {}]  }
   0x1   :  { %v2109_v0 = vld [vmem:[%s2834_s1 + $0x40] sm:$0xff]   ;;  %v2113_v4 = vld [vmem:[%s2834_s1 + $0x48] sm:$0xff]   ;;  %v2117_v8 = vld [vmem:[%s2834_s1 + $0x50] sm:$0xff]   ;;  %vm704_vm3 = vcmask 1041408   ;;  %vm737_vm4 = vcmask 1040384   ;;  %vm2198_vm6 = vmmov 1  }
   0x2   :  { %v2110_v1 = vld [vmem:[%s2834_s1 + $0xc0] sm:$0xff]   ;;  %1733 = vmatprep.subr.bf16.mxu0 %v2109_v0  ;;  %v2114_v5 = vld [vmem:[%s2834_s1 + $0xc8] sm:$0xff]   ;;  %v2118_v9 = vld [vmem:[%s2834_s1 + $0xd0] sm:$0xff]   ;;  %vm907_vm8 = vcmask 1042432  }
   0x3   :  { %v2111_v2 = vld [vmem:[%s2834_s1] sm:$0xff]   ;;  %1767 = vmatprep.subr.bf16.mxu1 %v2110_v1  ;;  %v2115_v6 = vld [vmem:[%s2834_s1 + $0x8] sm:$0xff]   ;;  %v2119_v10 = vld [vmem:[%s2834_s1 + $0x10] sm:$0xff]  }
   0x4   :  { %v2112_v3 = vld [vmem:[%s2834_s1 + $0x80] sm:$0xff]   ;;  %1734 = vmatpush3.bf16.msra.mxu0 %v2111_v2  ;;  %v2116_v7 = vld [vmem:[%s2834_s1 + $0x88] sm:$0xff]   ;;  %v2120_v11 = vld [vmem:[%s2834_s1 + $0x90] sm:$0xff]  }
   0x5   :  { %1768 = vmatpush3.bf16.msra.mxu1 %v2112_v3  ;;  %1735 = vmatprep.subr.bf16.mxu0 %v2113_v4  ;;  %v2121_v12 = vld [vmem:[%s2834_s1 + $0x58] sm:$0xff]   ;;  %v2125_v16 = vld [vmem:[%s2834_s1 + $0x60] sm:$0xff]   ;;  %v2129_v20 = vld [vmem:[%s2834_s1 + $0x68] sm:$0xff]  }
   0x6   :  { %1769 = vmatprep.subr.bf16.mxu1 %v2114_v5  ;;  %v2122_v13 = vld [vmem:[%s2834_s1 + $0xd8] sm:$0xff]   ;;  %v2126_v17 = vld [vmem:[%s2834_s1 + $0xe0] sm:$0xff]   ;;  %v2130_v21 = vld [vmem:[%s2834_s1 + $0xe8] sm:$0xff]  }
   0x7   :  { %v2123_v14 = vld [vmem:[%s2834_s1 + $0x18] sm:$0xff]   ;;  %v2127_v18 = vld [vmem:[%s2834_s1 + $0x20] sm:$0xff]   ;;  %v2131_v22 = vld [vmem:[%s2834_s1 + $0x28] sm:$0xff]  }
   0x8   :  { %1736 = vmatpush3.bf16.msra.mxu0 %v2115_v6  ;;  %v2124_v15 = vld [vmem:[%s2834_s1 + $0x98] sm:$0xff]   ;;  %v2128_v19 = vld [vmem:[%s2834_s1 + $0xa0] sm:$0xff]   ;;  %v2132_v23 = vld [vmem:[%s2834_s1 + $0xa8] sm:$0xff]  }
   0x9   :  { %1770 = vmatpush3.bf16.msra.mxu1 %v2116_v7  ;;  %1737 = vmatprep.subr.bf16.mxu0 %v2117_v8  ;;  %v2133_v24 = vld [vmem:[%s2834_s1 + $0x70] sm:$0xff]   ;;  %v2137_v28 = vld [vmem:[%s2834_s1 + $0x78] sm:$0xff]   ;;  %v2141_v32 = vld [vmem:[%s2835_s0 + $0x4] ss:$8 sps:$4 sm:$0xff]  }
   0xa   :  { %1771 = vmatprep.subr.bf16.mxu1 %v2118_v9  ;;  %v2134_v25 = vld [vmem:[%s2834_s1 + $0xf0] sm:$0xff]   ;;  %v2138_v29 = vld [vmem:[%s2834_s1 + $0xf8] sm:$0xff]   ;;  %v2143_v33 = vld [vmem:[%s2835_s0] ss:$8 sps:$4 sm:$0xff]   ;;  %233 = vmatprep.mubr.bf16.mxu0 %v2141_v32 }
   0xb   :  { %v2135_v26 = vld [vmem:[%s2834_s1 + $0x30] sm:$0xff]   ;;  %v2139_v30 = vld [vmem:[%s2834_s1 + $0x38] sm:$0xff]   ;;  %419 = vmatprep.mubr.bf16.mxu1 %v2141_v32  ;;  %v2144_v34 = vld [vmem:[%s2834_s1 + $0x140] sm:$0xff]  }
   0xc   :  { %1738 = vmatpush3.bf16.msra.mxu0 %v2119_v10  ;;  %v2136_v27 = vld [vmem:[%s2834_s1 + $0xb0] sm:$0xff]   ;;  %v2140_v31 = vld [vmem:[%s2834_s1 + $0xb8] sm:$0xff]   ;;  %v2145_v35 = vld [vmem:[%s2834_s1 + $0x100] sm:$0xff]  }
   0xd   :  { %1772 = vmatpush3.bf16.msra.mxu1 %v2120_v11  ;;  %1739 = vmatprep.subr.bf16.mxu0 %v2121_v12  ;;  %v2146_v36 = vld [vmem:[%s2834_s1 + $0x148] sm:$0xff]   ;;  %v2148_v38 = vld [vmem:[%s2835_s0 + $0x14] ss:$8 sps:$4 sm:$0xff]   ;;  %v2150_v40 = vld [vmem:[%s2835_s0 + $0x10] ss:$8 sps:$4 sm:$0xff]   ;;  %v2196_v11 = vmov 0.0  }
   0xe   :  { %1773 = vmatprep.subr.bf16.mxu1 %v2122_v13  ;;  %v2147_v37 = vld [vmem:[%s2834_s1 + $0x108] sm:$0xff]   ;;  %v2151_v39 = vld [vmem:[%s2834_s1 + $0x150] sm:$0xff]   ;;  %v2153_v42 = vld [vmem:[%s2834_s1 + $0x158] sm:$0xff]   ;;  %1518 = vst [vmem:[%s2841_s10 + $0x12] sm:$0x3f] %v2196_v11 }
   0xf   :  { %v2152_v41 = vld [vmem:[%s2834_s1 + $0x110] sm:$0xff]   ;;  %v2155_v43 = vld [vmem:[%s2835_s0 + $0x24] ss:$8 sps:$4 sm:$0xff]   ;;  %v2154_v44 = vld [vmem:[%s2834_s1 + $0x118] sm:$0xff]   ;;  %1519 = vst [vmem:[%s2841_s10 + $0x2a] sm:$0x3f] %v2196_v11 }
  0x10   :  { %1740 = vmatpush3.bf16.msra.mxu0 %v2123_v14  ;;  %v2158_v45 = vld [vmem:[%s2834_s1 + $0x160] sm:$0xff]   ;;  %v2160_v48 = vld [vmem:[%s2834_s1 + $0x168] sm:$0xff]   ;;  %v2162_v50 = vld [vmem:[%s2834_s1 + $0x170] sm:$0xff]  }
  0x11   :  { %1774 = vmatpush3.bf16.msra.mxu1 %v2124_v15  ;;  %1741 = vmatprep.subr.bf16.mxu0 %v2125_v16  ;;  %v2157_v46 = vld [vmem:[%s2835_s0 + $0x20] ss:$8 sps:$4 sm:$0xff]   ;;  %v2163_v51 = vld [vmem:[%s2834_s1 + $0x130] sm:$0xff]   ;;  %v2164_v52 = vld [vmem:[%s2834_s1 + $0x178] sm:$0xff]  }
  0x12   :  { %1775 = vmatprep.subr.bf16.mxu1 %v2126_v17  ;;  %v2159_v47 = vld [vmem:[%s2834_s1 + $0x120] sm:$0xff]   ;;  %v2161_v49 = vld [vmem:[%s2834_s1 + $0x128] sm:$0xff]   ;;  %v2165_v53 = vld [vmem:[%s2834_s1 + $0x138] sm:$0xff]  }
  0x13   :  { %v739_v54 = vld [vmem:[%s2836_s9] sm:$0xff]  ;;  %v740_v55 = vld [vmem:[%s2836_s9 + $0x8] sm:$0xff]  ;;  %v741_v58 = vld [vmem:[%s2836_s9 + $0x10] sm:$0xff] }
  0x14   :  { %1742 = vmatpush3.bf16.msra.mxu0 %v2127_v18  ;;  %v2422_v56 = vpack.c.bf16 %v740_v55, %v739_v54  ;;  %v742_v59 = vld [vmem:[%s2836_s9 + $0x18] sm:$0xff]  ;;  %v743_v61 = vld [vmem:[%s2836_s9 + $0x20] sm:$0xff]  ;;  %v744_v62 = vld [vmem:[%s2836_s9 + $0x28] sm:$0xff] }
  0x15   :  { %1776 = vmatpush3.bf16.msra.mxu1 %v2128_v19  ;;  %1743 = vmatprep.subr.bf16.mxu0 %v2129_v20  ;;  %v2433_v60 = vpack.c.bf16 %v742_v59, %v741_v58  ;;  %v2443_v63 = vpack.c.bf16 %v744_v62, %v743_v61  ;;  %v745_v0 = vld [vmem:[%s2836_s9 + $0x30] sm:$0xff]  ;;  %v746_v1 = vld [vmem:[%s2836_s9 + $0x38] sm:$0xff]  ;;  %v747_v3 = vld [vmem:[%s2836_s9 + $0x40] sm:$0xff] }
  0x16   :  { %1777 = vmatprep.subr.bf16.mxu1 %v2130_v21  ;;  %v2453_v2 = vpack.c.bf16 %v746_v1, %v745_v0  ;;  %v748_v4 = vld [vmem:[%s2836_s9 + $0x48] sm:$0xff]  ;;  %v749_v6 = vld [vmem:[%s2836_s9 + $0x50] sm:$0xff]  ;;  %v750_v7 = vld [vmem:[%s2836_s9 + $0x58] sm:$0xff] }
  0x17   :  { %v2463_v5 = vpack.c.bf16 %v748_v4, %v747_v3  ;;  %v2473_v8 = vpack.c.bf16 %v750_v7, %v749_v6  ;;  %v751_v9 = vld [vmem:[%s2836_s9 + $0x60] sm:$0xff]  ;;  %v752_v10 = vld [vmem:[%s2836_s9 + $0x68] sm:$0xff]  ;;  %v753_v13 = vld [vmem:[%s2836_s9 + $0x70] sm:$0xff] }
  0x18   :  { %1744 = vmatpush3.bf16.msra.mxu0 %v2131_v22  ;;  %v2487_v12 = vpack.c.bf16 %v752_v10, %v751_v9  ;;  %v754_v14 = vld [vmem:[%s2836_s9 + $0x78] sm:$0xff]  ;;  %vm2635_vm5 = vmneg %vm737_vm4 }
  0x19   :  { %1778 = vmatpush3.bf16.msra.mxu1 %v2132_v23  ;;  %1745 = vmatprep.subr.bf16.mxu0 %v2133_v24  ;;  %v2497_v15 = vpack.c.bf16 %v754_v14, %v753_v13  ;;  %vm2643_vm7 = vmpackc.low %vm2198_vm6, %vm2635_vm5 }
  0x1a   :  { %1779 = vmatprep.subr.bf16.mxu1 %v2134_v25  ;;  %vm2674_vm9 = vmpackc.low %vm2635_vm5, %vm907_vm8 }
  0x1b   :  { %vm2701_vm10 = vmpackc.low %vm907_vm8, %vm2198_vm6 }
  0x1c   :  { %1746 = vmatpush3.bf16.msra.mxu0 %v2135_v26 }
  0x1d   :  { %1780 = vmatpush3.bf16.msra.mxu1 %v2136_v27  ;;  %1747 = vmatprep.subr.bf16.mxu0 %v2137_v28 }
  0x1e   :  { %1781 = vmatprep.subr.bf16.mxu1 %v2138_v29 }
  0x20   :  { %1748 = vmatpush3.bf16.msra.mxu0 %v2139_v30 }
  0x21   :  { %1782 = vmatpush3.bf16.msra.mxu1 %v2140_v31  ;;  %1801 = vmatprep.subr.bf16.mxu0 %v2144_v34 }
  0x22   :  { %2056 = vmatprep.subr.bf16.mxu1 %v2194_v57 }
  0x23   :  { %234 = vmatmul.mubr.bf16.vlgmr.msra.gmra.mrb[0].mxu0 %v2143_v33 }
  0x24   :  { %420 = vmatmul.mubr.bf16.vlgmr.msra.gmra.mrb[0].mxu1 %v2143_v33  ;;  %1802 = vmatpush3.bf16.msra.mxu0 %v2145_v35 }
  0x25   :  { %1803 = vmatprep.subr.bf16.mxu0 %v2146_v36  ;;  %427 = vmatprep.mubr.bf16.mxu1 %v2148_v38 }
  0x26   :  { %241 = vmatprep.mubr.bf16.mxu0 %v2148_v38  ;;  %2058 = vmatpush3.bf16.msra.mxu1 %v2422_v56 }
  0x27   :  { %2059 = vmatprep.subr.bf16.mxu1 %v2194_v57 }
  0x28   :  { %1804 = vmatpush3.bf16.msra.mxu0 %v2147_v37 }
  0x29   :  { %1805 = vmatprep.subr.bf16.mxu0 %v2151_v39 }
  0x2a   :  { %2061 = vmatpush3.bf16.msra.mxu1 %v2433_v60 }
  0x2b   :  { %242 = vmatmul.mubr.bf16.gmra.mrb[4].mxu0 %v2150_v40  ;;  %2062 = vmatprep.subr.bf16.mxu1 %v2194_v57 }
  0x2c   :  { %428 = vmatmul.mubr.bf16.gmra.mrb[4].mxu1 %v2150_v40  ;;  %1806 = vmatpush3.bf16.msra.mxu0 %v2152_v41 }
  0x2d   :  { %435 = vmatprep.mubr.bf16.mxu1 %v2155_v43  ;;  %1807 = vmatprep.subr.bf16.mxu0 %v2153_v42 }
  0x2e   :  { %249 = vmatprep.mubr.bf16.mxu0 %v2155_v43  ;;  %2064 = vmatpush3.bf16.msra.mxu1 %v2443_v63 }
  0x2f   :  { %2065 = vmatprep.subr.bf16.mxu1 %v2194_v57 }
  0x30   :  { %1808 = vmatpush3.bf16.msra.mxu0 %v2154_v44 }
  0x31   :  { %1809 = vmatprep.subr.bf16.mxu0 %v2158_v45 }
  0x32   :  { %2067 = vmatpush3.bf16.msra.mxu1 %v2453_v2 }
  0x33   :  { %250 = vmatmul.mubr.bf16.gmra.mrb[8].mxu0 %v2157_v46  ;;  %2068 = vmatprep.subr.bf16.mxu1 %v2194_v57 }
  0x34   :  { %436 = vmatmul.mubr.bf16.gmra.mrb[8].mxu1 %v2157_v46  ;;  %605 = vmatprep.mubr.bf16.mxu0 %v2141_v32 }
  0x35   :  { %1810 = vmatpush3.bf16.msra.mxu0 %v2159_v47  ;;  %1934 = vmatprep.mubr.msk.f32.mxu1 %vm2195_vm0, %v2196_v11 }
  0x36   :  { %1811 = vmatprep.subr.bf16.mxu0 %v2160_v48  ;;  %2070 = vmatpush3.bf16.msra.mxu1 %v2463_v5 }
  0x37   :  { %2071 = vmatprep.subr.bf16.mxu1 %v2194_v57 }
  0x39   :  { %1812 = vmatpush3.bf16.msra.mxu0 %v2161_v49 }
  0x3a   :  { %1813 = vmatprep.subr.bf16.mxu0 %v2162_v50  ;;  %2073 = vmatpush3.bf16.msra.mxu1 %v2473_v8 }
  0x3b   :  { %2074 = vmatprep.subr.bf16.mxu1 %v2194_v57 }
  0x3d   :  { %1814 = vmatpush3.bf16.msra.mxu0 %v2163_v51 }
  0x3e   :  { %1815 = vmatprep.subr.bf16.mxu0 %v2164_v52  ;;  %2076 = vmatpush3.bf16.msra.mxu1 %v2487_v12 }
  0x3f   :  { %2077 = vmatprep.subr.bf16.mxu1 %v2194_v57 }
  0x41   :  { %1816 = vmatpush3.bf16.msra.mxu0 %v2165_v53 }
  0x42   :  { %1937 = vmatprep.subr.bf16.mxu0 %v2196_v11  ;;  %2079 = vmatpush3.bf16.msra.mxu1 %v2497_v15 }
  0x43   :  { %1965 = vmatprep.subr.bf16.mxu1 %v2196_v11 }
  0x44   :  { %606 = vmatmul.mubr.bf16.vlgmr.msra.gmra.mrb[12].mxu0 %v2143_v33 }
  0x45   :  { %613 = vmatprep.mubr.bf16.mxu0 %v2148_v38 }
  0x4c   :  { %614 = vmatmul.mubr.bf16.gmra.mrb[16].mxu0 %v2150_v40 }
  0x4d   :  { %621 = vmatprep.mubr.bf16.mxu0 %v2155_v43 }
  0x54   :  { %622 = vmatmul.mubr.bf16.gmra.mrb[20].mxu0 %v2157_v46 }
  0x55   :  { %1953 = vmatprep.mubr.msk.bf16.mxu0 %vm2195_vm0, %v2196_v11 }
  0xf6   :  { %v1749_v16 = vpop.f32.mrb[0].mxu0 }
  0xf7   :  { %v1783_v17 = vpop.f32.mrb[0].mxu1  ;;  %v1750_v18 = vpop.f32.mrb[1].mxu0 }
  0xf8   :  { %v1751_v19 = vadd.f32 %v1750_v18, %v1749_v16  ;;  %v1784_v20 = vpop.f32.mrb[1].mxu1  ;;  %v1752_v21 = vpop.f32.mrb[2].mxu0 }
  0xf9   :  { %v1785_v22 = vadd.f32 %v1784_v20, %v1783_v17  ;;  %v1786_v23 = vpop.f32.mrb[2].mxu1  ;;  %v1753_v24 = vpop.f32.mrb[3].mxu0 }
  0xfa   :  { %v1754_v25 = vadd.f32 %v1753_v24, %v1752_v21  ;;  %v1787_v26 = vpop.f32.mrb[3].mxu1 }
  0xfb   :  { %v637_v27 = vrot.slane %v1785_v22, 1  ;;  %v1788_v28 = vadd.f32 %v1787_v26, %v1786_v23 }
  0xfd   :  { %v638_v29 = vrot.slane %v1788_v28, 1 }
  0xfe   :  { %v1755_v30 = vpop.f32.mrb[4].mxu0 }
  0xff   :  { %v639_v31 = vsel %vm636_vm1, %v637_v27, %v638_v29  ;;  %v1789_v32 = vpop.f32.mrb[4].mxu1  ;;  %v1756_v33 = vpop.f32.mrb[5].mxu0 }
 0x100   :  { %v653_v34 = vadd.f32 %v1751_v19, %v639_v31  ;;  %v1790_v35 = vpop.f32.mrb[5].mxu1  ;;  %v1757_v36 = vadd.f32 %v1756_v33, %v1755_v30  ;;  %v1758_v37 = vpop.f32.mrb[6].mxu0 }
 0x101   :  { %v1791_v38 = vadd.f32 %v1790_v35, %v1789_v32  ;;  %v1792_v39 = vpop.f32.mrb[6].mxu1  ;;  %v1759_v40 = vpop.f32.mrb[7].mxu0 }
 0x102   :  { %v1793_v41 = vpop.f32.mrb[7].mxu1  ;;  %v1760_v42 = vadd.f32 %v1759_v40, %v1758_v37  ;;  %v1642_v40 = vld [vmem:[%s2837_s3] ss:$0 sm:$0xff] }
 0x103   :  { %v640_v43 = vrot.slane %v1791_v38, 1  ;;  %v1794_v44 = vadd.f32 %v1793_v41, %v1792_v39 }
 0x105   :  { %v641_v45 = vsel %vm636_vm1, %v638_v29, %v640_v43  ;;  %v655_v46 = vadd.f32 %v1757_v36, %v640_v43  ;;  %v642_v54 = vrot.slane %v1794_v44, 1 }
 0x106   :  { %v654_v47 = vadd.f32 %v1754_v25, %v641_v45  ;;  %v1761_v48 = vpop.f32.mrb[8].mxu0 }
 0x107   :  { %v1795_v49 = vpop.f32.mrb[8].mxu1  ;;  %v1762_v50 = vpop.f32.mrb[9].mxu0 }
 0x108   :  { %v1796_v51 = vpop.f32.mrb[9].mxu1  ;;  %v1763_v52 = vadd.f32 %v1762_v50, %v1761_v48  ;;  %v1764_v53 = vpop.f32.mrb[10].mxu0 }
 0x109   :  { %v1797_v55 = vadd.f32 %v1796_v51, %v1795_v49  ;;  %v1798_v58 = vpop.f32.mrb[10].mxu1  ;;  %v1765_v59 = vpop.f32.mrb[11].mxu0 }
 0x10a   :  { %v1799_v61 = vpop.f32.mrb[11].mxu1  ;;  %v1766_v62 = vadd.f32 %v1765_v59, %v1764_v53 }
 0x10b   :  { %v643_v0 = vrot.slane %v1797_v55, 1  ;;  %v1800_v1 = vadd.f32 %v1799_v61, %v1798_v58 }
 0x10d   :  { %v644_v3 = vsel %vm636_vm1, %v642_v54, %v643_v0  ;;  %v645_v4 = vrot.slane %v1800_v1, 1 }
 0x10e   :  { %v656_v6 = vadd.f32 %v1760_v42, %v644_v3 }
 0x10f   :  { %v646_v7 = vsel %vm636_vm1, %v643_v0, %v645_v4  ;;  %v658_v9 = vadd.f32 %v1766_v62, %v645_v4 }
 0x110   :  { %v657_v10 = vadd.f32 %v1763_v52, %v646_v7 }
 0x117   :  { %v1817_v13 = vpop.f32.mrb[12].mxu0 }
 0x118   :  { %v1818_v14 = vpop.f32.mrb[13].mxu0 }
 0x119   :  { %v1819_v16 = vadd.f32 %v1818_v14, %v1817_v13  ;;  %v1820_v17 = vpop.f32.mrb[14].mxu0 }
 0x11a   :  { %v1821_v18 = vpop.f32.mrb[15].mxu0 }
 0x11b   :  { %v1822_v19 = vadd.f32 %v1821_v18, %v1820_v17  ;;  %v666_v20 = vrot.slane %v1819_v16, 2 }
 0x11d   :  { %v667_v21 = vrot.slane %v1822_v19, 2 }
 0x11f   :  { %v668_v22 = vsel %vm665_vm2, %v666_v20, %v667_v21  ;;  %v1823_v23 = vpop.f32.mrb[16].mxu0 }
 0x120   :  { %v682_v24 = vadd.f32 %v668_v22, %v653_v34  ;;  %v1824_v25 = vpop.f32.mrb[17].mxu0 }
 0x121   :  { %v1825_v26 = vadd.f32 %v1824_v25, %v1823_v23  ;;  %v1826_v27 = vpop.f32.mrb[18].mxu0 }
 0x122   :  { %v1827_v28 = vpop.f32.mrb[19].mxu0  ;;  %v2514_v48 = vadd.f32 %v1642_v40, %v682_v24 }
 0x123   :  { %v669_v29 = vrot.slane %v1825_v26, 2  ;;  %v1828_v30 = vadd.f32 %v1827_v28, %v1826_v27 }
 0x124   :  { %v717_v55 = vmul.f32 %v2514_v48, %v2514_v48 }
 0x125   :  { %v670_v31 = vsel %vm665_vm2, %v667_v21, %v669_v29  ;;  %v684_v32 = vadd.f32 %v669_v29, %v655_v46  ;;  %v671_v34 = vrot.slane %v1828_v30, 2 }
 0x126   :  { %v683_v33 = vadd.f32 %v670_v31, %v654_v47 }
 0x127   :  { %v1829_v35 = vpop.f32.mrb[20].mxu0  ;;  %v2511_v43 = vadd.f32 %v1642_v40, %v684_v32 }
 0x128   :  { %v1830_v36 = vpop.f32.mrb[21].mxu0  ;;  %v2516_v47 = vadd.f32 %v1642_v40, %v683_v33 }
 0x129   :  { %v1831_v37 = vadd.f32 %v1830_v36, %v1829_v35  ;;  %v1832_v38 = vpop.f32.mrb[22].mxu0  ;;  %v719_v53 = vmul.f32 %v2511_v43, %v2511_v43  ;;  %v705_v61 = vsel %vm704_vm3, %v2511_v43, 0.0 }
 0x12a   :  { %v1833_v39 = vpop.f32.mrb[23].mxu0  ;;  %v718_v62 = vmul.f32 %v2516_v47, %v2516_v47 }
 0x12b   :  { %v672_v41 = vrot.slane %v1831_v37, 2  ;;  %v1834_v42 = vadd.f32 %v1833_v39, %v1832_v38  ;;  %v2166_v37 = vld [vmem:[%s2838_s2] sm:$0xff]   ;;  %v2168_v39 = vld [vmem:[%s2838_s2 + $0x8] sm:$0xff]  }
 0x12c   :  { %v2167_v38 = vld [vmem:[%s2838_s2 + $0x40] sm:$0xff]   ;;  %1938 = vmatpush3.bf16.msra.mxu0 %v2166_v37 }
 0x12d   :  { %v673_v44 = vsel %vm665_vm2, %v671_v34, %v672_v41  ;;  %v674_v45 = vrot.slane %v1834_v42, 2  ;;  %1939 = vmatprep.subr.bf16.mxu0 %v2196_v11  ;;  %v2170_v34 = vld [vmem:[%s2838_s2 + $0x10] sm:$0xff]   ;;  %v2172_v42 = vld [vmem:[%s2838_s2 + $0x18] sm:$0xff]  }
 0x12e   :  { %v685_v46 = vadd.f32 %v673_v44, %v656_v6  ;;  %v2173_v44 = vld [vmem:[%s2838_s2 + $0x58] sm:$0xff]  }
 0x12f   :  { %v675_v49 = vsel %vm665_vm2, %v672_v41, %v674_v45  ;;  %v687_v50 = vadd.f32 %v674_v45, %v658_v9  ;;  %v725_v9 = vsel %vm704_vm3, %v719_v53, 0.0  ;;  %v2171_v41 = vld [vmem:[%s2838_s2 + $0x50] sm:$0xff]   ;;  %v2174_v45 = vld [vmem:[%s2838_s2 + $0x20] sm:$0xff]  }
 0x130   :  { %v2519_v51 = vadd.f32 %v1642_v40, %v685_v46  ;;  %v686_v52 = vadd.f32 %v675_v49, %v657_v10  ;;  %1940 = vmatpush3.bf16.msra.mxu0 %v2168_v39  ;;  %v2175_v46 = vld [vmem:[%s2838_s2 + $0x60] sm:$0xff]   ;;  %v2176_v49 = vld [vmem:[%s2838_s2 + $0x28] sm:$0xff]   ;;  %v2179_v53 = vld [vmem:[%s2838_s2 + $0x70] sm:$0xff]  }
 0x131   :  { %v2523_v54 = vadd.f32 %v1642_v40, %v687_v50  ;;  %1941 = vmatprep.subr.bf16.mxu0 %v2196_v11  ;;  %v2177_v50 = vld [vmem:[%s2838_s2 + $0x68] sm:$0xff]  }
 0x132   :  { %v720_v58 = vmul.f32 %v2519_v51, %v2519_v51  ;;  %v2529_v59 = vadd.f32 %v1642_v40, %v686_v52  ;;  %v702_v3 = vadd.f32 %v2519_v51, %v2514_v48  ;;  %v2169_v40 = vld [vmem:[%s2838_s2 + $0x48] sm:$0xff]   ;;  %v2178_v52 = vld [vmem:[%s2838_s2 + $0x30] sm:$0xff]  }
 0x133   :  { %v706_v0 = vsel %vm704_vm3, %v2523_v54, 0.0  ;;  %v722_v1 = vmul.f32 %v2523_v54, %v2523_v54 }
 0x134   :  { %v703_v4 = vadd.f32 %v2529_v59, %v2516_v47  ;;  %v707_v6 = vadd.f32 %v706_v0, %v705_v61  ;;  %v721_v7 = vmul.f32 %v2529_v59, %v2529_v59  ;;  %v723_v10 = vadd.f32 %v720_v58, %v717_v55  ;;  %1942 = vmatpush3.bf16.msra.mxu0 %v2170_v34  ;;  %v2180_v55 = vld [vmem:[%s2838_s2 + $0x38] sm:$0xff]  }
 0x135   :  { %v726_v13 = vsel %vm704_vm3, %v722_v1, 0.0  ;;  %1943 = vmatprep.subr.bf16.mxu0 %v2196_v11  ;;  %v2181_v58 = vld [vmem:[%s2838_s2 + $0x78] sm:$0xff]  }
 0x136   :  { %v708_v14 = vadd.f32 %v703_v4, %v702_v3  ;;  %v709_v16 = vsel %vm704_vm3, %v707_v6, 0.0  ;;  %v724_v17 = vadd.f32 %v721_v7, %v718_v62  ;;  %v727_v18 = vadd.f32 %v726_v13, %v725_v9 }
 0x137   :  { %v2197_v7 = vmov 1966171168  }
 0x138   :  { %v710_v19 = vadd.f32 %v709_v16, %v708_v14  ;;  %v728_v20 = vadd.f32 %v724_v17, %v723_v10  ;;  %v729_v21 = vsel %vm704_vm3, %v727_v18, 0.0  ;;  %1944 = vmatpush3.bf16.msra.mxu0 %v2172_v42  ;;  %v835_v9 = vunpack.c.l.s4 %v2197_v7  ;;  %v2186_v7 = vld [vmem:[%s2838_s2 + $0xa0] sm:$0xff]  }
 0x139   :  { %1945 = vmatprep.subr.bf16.mxu0 %v2196_v11  ;;  %v837_v10 = vlaneseq }
 0x13a   :  { %v711_v22 = vrot.slane %v710_v19, 4  ;;  %v730_v23 = vadd.f32 %v729_v21, %v728_v20  ;;  %v836_v13 = vunpack.c.0.s8 %v835_v9  ;;  %v700_v20 = vld [vmem:[%s2839_s4] sm:$0x1] }
 0x13b   :  { %v838_v14 = vshrl.u32 %v837_v10, 7  ;;  %v2188_v10 = vld [vmem:[%s2838_s2 + $0xb0] sm:$0xff]  }
 0x13c   :  { %v712_v24 = vadd.f32 %v711_v22, %v710_v19  ;;  %v731_v25 = vrot.slane %v730_v23, 4  ;;  %1946 = vmatpush3.bf16.msra.mxu0 %v2174_v45 }
 0x13d   :  { %1947 = vmatprep.subr.bf16.mxu0 %v2196_v11  ;;  %v2616_v16 = vsub.s32 %v836_v13, %v838_v14  ;;  %v2623_v22 = vsub.s32 0, %v838_v14 }
 0x13e   :  { %v713_v26 = vrot.slane %v712_v24, 2  ;;  %v732_v27 = vadd.f32 %v731_v25, %v730_v23 }
 0x140   :  { %v714_v28 = vadd.f32 %v713_v26, %v712_v24  ;;  %v733_v29 = vrot.slane %v732_v27, 2  ;;  %1948 = vmatpush3.bf16.msra.mxu0 %v2176_v49  ;;  %v701_v24 = vld [vmem:[%s2840_s5] sm:$0x1] }
 0x141   :  { %1949 = vmatprep.subr.bf16.mxu0 %v2196_v11 }
 0x142   :  { %v715_v30 = vrot.slane %v714_v28, 1  ;;  %v734_v31 = vadd.f32 %v733_v29, %v732_v27 }
 0x144   :  { %v735_v32 = vrot.slane %v734_v31, 1  ;;  %v716_v33 = vadd.f32 %v715_v30, %v714_v28  ;;  %1950 = vmatpush3.bf16.msra.mxu0 %v2178_v52 }
 0x145   :  { %1951 = vmatprep.subr.bf16.mxu0 %v2196_v11 }
 0x146   :  { %v736_v35 = vadd.f32 %v735_v32, %v734_v31 }
 0x148   :  { %v738_v36 = vsel %vm737_vm4, %v716_v33, %v736_v35  ;;  %1952 = vmatpush3.bf16.msra.mxu0 %v2180_v55 }
 0x149   :  { %1935 = vmatmul.mubr.f32.vlgmr.msra.gmra.mrb[12].mxu1 %v738_v36  ;;  %1993 = vmatprep.subr.bf16.mxu0 %v2196_v11 }
 0x14a   :  { %1981 = vmatprep.mubr.msk.bf16.mxu1 %vm2195_vm0, %v2196_v11  ;;  %1966 = vmatpush3.bf16.msra.mxu1 %v2167_v38 }
 0x14b   :  { %1967 = vmatprep.subr.bf16.mxu1 %v2196_v11 }
 0x14e   :  { %1968 = vmatpush3.bf16.msra.mxu1 %v2169_v40 }
 0x14f   :  { %1969 = vmatprep.subr.bf16.mxu1 %v2196_v11 }
 0x152   :  { %1970 = vmatpush3.bf16.msra.mxu1 %v2171_v41 }
 0x153   :  { %1971 = vmatprep.subr.bf16.mxu1 %v2196_v11 }
 0x156   :  { %1972 = vmatpush3.bf16.msra.mxu1 %v2173_v44 }
 0x157   :  { %1973 = vmatprep.subr.bf16.mxu1 %v2196_v11 }
 0x15a   :  { %1974 = vmatpush3.bf16.msra.mxu1 %v2175_v46 }
 0x15b   :  { %1975 = vmatprep.subr.bf16.mxu1 %v2196_v11 }
 0x15e   :  { %1976 = vmatpush3.bf16.msra.mxu1 %v2177_v50 }
 0x15f   :  { %1977 = vmatprep.subr.bf16.mxu1 %v2196_v11 }
 0x162   :  { %1978 = vmatpush3.bf16.msra.mxu1 %v2179_v53 }
 0x163   :  { %1979 = vmatprep.subr.bf16.mxu1 %v2196_v11 }
 0x166   :  { %1980 = vmatpush3.bf16.msra.mxu1 %v2181_v58 }
 0x167   :  { %2080 = vmatprep.subr.bf16.mxu1 %v2194_v57 }
 0x21c   :  { %v821_v61 = vpop.f32.mrb[12].mxu1 }
 0x21d   :  { %v825_v62 = vmul.f32 0.0015432099, %v821_v61  ;;  %v1936_v0 = vpop.f32.mrb[13].mxu1 }
 0x21f   :  { %v826_v1 = vmul.f32 %v825_v62, %v825_v62 }
 0x221   :  { %v828_v3 = vrot.slane %v826_v1, 7 }
 0x223   :  { %v830_v4 = vsub.f32 %v825_v62, %v828_v3 }
 0x225   :  { %v831_v6 = vadd.f32 1e-05, %v830_v4 }
 0x227   :  { %2190 = vrsqrt.f32 %v831_v6 }
 0x231   :  { %v2191_v17 = vpop.eup %2190 }
 0x232   :  { %v840_v18 = vrot.slane %v2191_v17, %v2616_v16 }
 0x234   :  { %v841_v19 = vcombine.high %v840_v18, %v840_v18 }
 0x236   :  { %v848_v21 = vrot.slane %v841_v19, %v2616_v16 }
 0x238   :  { %v850_v23 = vmul.f32 %v848_v21, %v700_v20 }
 0x23a   :  { %v851_v25 = vmul.f32 %v850_v23, %v825_v62  ;;  %v857_v26 = vrot.slane %v850_v23, %v2623_v22  ;;  %v2184_v62 = vld [vmem:[%s2838_s2 + $0x90] sm:$0xff]  }
 0x23c   :  { %v852_v27 = vsub.f32 %v701_v24, %v851_v25  ;;  %v859_v29 = vmul.f32 %v857_v26, %v2514_v48  ;;  %v860_v30 = vmul.f32 %v857_v26, %v2516_v47  ;;  %v861_v31 = vmul.f32 %v857_v26, %v2511_v43 }
 0x23d   :  { %v862_v36 = vmul.f32 %v857_v26, %v2519_v51  ;;  %v2182_v51 = vld [vmem:[%s2838_s2 + $0x80] sm:$0xff]   ;;  %v863_v42 = vmul.f32 %v857_v26, %v2529_v59  ;;  %v864_v44 = vmul.f32 %v857_v26, %v2523_v54  ;;  %v2183_v59 = vld [vmem:[%s2838_s2 + $0x88] sm:$0xff]  }
 0x23e   :  { %v869_v28 = vrot.slane %v852_v27, %v2623_v22 }
 0x240   :  { %v871_v32 = vadd.f32 %v869_v28, %v859_v29  ;;  %v872_v33 = vadd.f32 %v869_v28, %v860_v30  ;;  %v873_v35 = vadd.f32 %v869_v28, %v861_v31  ;;  %v874_v40 = vadd.f32 %v869_v28, %v862_v36 }
 0x241   :  { %v875_v50 = vadd.f32 %v869_v28, %v863_v42  ;;  %v876_v52 = vadd.f32 %v869_v28, %v864_v44 }
 0x242   :  { %v877_v37 = vmax.f32 %v871_v32, 0.0  ;;  %v878_v38 = vmax.f32 %v872_v33, 0.0  ;;  %v879_v48 = vmax.f32 %v873_v35, 0.0  ;;  %v880_v46 = vmax.f32 %v874_v40, 0.0 }
 0x243   :  { %v881_v55 = vmax.f32 %v875_v50, 0.0  ;;  %v882_v58 = vmax.f32 %v876_v52, 0.0 }
 0x244   :  { %v889_v34 = vrot.slane %v877_v37, 7  ;;  %v890_v41 = vrot.slane %v878_v38, 7  ;;  %v892_v49 = vrot.slane %v879_v48, 7  ;;  %v894_v54 = vrot.slane %v880_v46, 7 }
 0x245   :  { %v895_v1 = vrot.slane %v881_v55, 7  ;;  %v897_v3 = vrot.slane %v882_v58, 7 }
 0x246   :  { %v891_v47 = vsel %vm737_vm4, %v889_v34, %v890_v41  ;;  %v893_v53 = vsel %vm737_vm4, %v890_v41, %v892_v49 }
 0x247   :  { %v2652_v45 = vpack.c.bf16 %v891_v47, %v889_v34  ;;  %v1657_v0 = vpack.c.bf16 %v894_v54, %v893_v53  ;;  %v898_v4 = vsel %vm737_vm4, %v895_v1, %v897_v3 }
 0x249   :  { %1954 = vmatmul.mubr.msk.bf16.vlgmr.msra.gmra.mrb[24].mxu0 %vm2643_vm7, %v2652_v45  ;;  %1982 = vmatmul.mubr.msk.bf16.vlgmr.msra.gmra.mrb[16].mxu1 %vm2643_vm7, %v2652_v45 }
 0x24a   :  { %1994 = vmatpush3.bf16.msra.mxu0 %v2182_v51  ;;  %1957 = vmatprep.mubr.msk.bf16.mxu0 %vm2195_vm0, %v2196_v11 }
 0x24b   :  { %1995 = vmatprep.subr.bf16.mxu0 %v2196_v11  ;;  %1985 = vmatprep.mubr.msk.bf16.mxu1 %vm2195_vm0, %v2196_v11 }
 0x24c   :  { %2082 = vmatpush3.bf16.msra.mxu1 %v2422_v56  ;;  %v2185_v56 = vld [vmem:[%s2838_s2 + $0x98] sm:$0xff]  }
 0x24d   :  { %2083 = vmatprep.subr.bf16.mxu1 %v2194_v57 }
 0x24e   :  { %1996 = vmatpush3.bf16.msra.mxu0 %v2183_v59 }
 0x24f   :  { %1997 = vmatprep.subr.bf16.mxu0 %v2196_v11 }
 0x250   :  { %2085 = vmatpush3.bf16.msra.mxu1 %v2433_v60  ;;  %v896_v60 = vsel %vm737_vm4, %v894_v54, %v895_v1 }
 0x251   :  { %1958 = vmatmul.mubr.msk.bf16.gmra.mrb[28].mxu0 %vm2674_vm9, %v1657_v0  ;;  %1986 = vmatmul.mubr.msk.bf16.gmra.mrb[20].mxu1 %vm2674_vm9, %v1657_v0  ;;  %v1660_v9 = vpack.c.bf16 %v898_v4, %v896_v60 }
 0x252   :  { %1998 = vmatpush3.bf16.msra.mxu0 %v2184_v62  ;;  %1961 = vmatprep.mubr.msk.bf16.mxu0 %vm2195_vm0, %v2196_v11 }
 0x253   :  { %1999 = vmatprep.subr.bf16.mxu0 %v2196_v11  ;;  %1989 = vmatprep.mubr.msk.bf16.mxu1 %vm2195_vm0, %v2196_v11 }
 0x254   :  { %2086 = vmatprep.subr.bf16.mxu1 %v2194_v57 }
 0x255   :  { %2088 = vmatpush3.bf16.msra.mxu1 %v2443_v63  ;;  %v2187_v63 = vld [vmem:[%s2838_s2 + $0xa8] sm:$0xff]  }
 0x256   :  { %2000 = vmatpush3.bf16.msra.mxu0 %v2185_v56  ;;  %2089 = vmatprep.subr.bf16.mxu1 %v2194_v57 }
 0x257   :  { %2001 = vmatprep.subr.bf16.mxu0 %v2196_v11 }
 0x259   :  { %1962 = vmatmul.mubr.msk.bf16.gmra.mrb[32].mxu0 %vm2701_vm10, %v1660_v9  ;;  %1990 = vmatmul.mubr.msk.bf16.gmra.mrb[24].mxu1 %vm2701_vm10, %v1660_v9 }
 0x25a   :  { %2002 = vmatpush3.bf16.msra.mxu0 %v2186_v7  ;;  %2009 = vmatprep.mubr.msk.bf16.mxu0 %vm2195_vm0, %v2196_v11  ;;  %v1732_v7 = vld [vmem:[%s2842_s6] ss:$0 sm:$0xff] }
 0x25b   :  { %2003 = vmatprep.subr.bf16.mxu0 %v2196_v11  ;;  %2091 = vmatpush3.bf16.msra.mxu1 %v2453_v2  ;;  %v2189_v2 = vld [vmem:[%s2838_s2 + $0xb8] sm:$0xff]  }
 0x25c   :  { %2092 = vmatprep.subr.bf16.mxu1 %v2194_v57  ;;  %2053 = vmatprep.mubr.msk.f32.mxu1 %vm2195_vm0, %v2196_v11 }
 0x25e   :  { %2004 = vmatpush3.bf16.msra.mxu0 %v2187_v63 }
 0x25f   :  { %2005 = vmatprep.subr.bf16.mxu0 %v2196_v11  ;;  %2094 = vmatpush3.bf16.msra.mxu1 %v2463_v5 }
 0x260   :  { %2095 = vmatprep.subr.bf16.mxu1 %v2194_v57 }
 0x262   :  { %2006 = vmatpush3.bf16.msra.mxu0 %v2188_v10 }
 0x263   :  { %2007 = vmatprep.subr.bf16.mxu0 %v2196_v11  ;;  %2097 = vmatpush3.bf16.msra.mxu1 %v2473_v8 }
 0x264   :  { %2098 = vmatprep.subr.bf16.mxu1 %v2194_v57 }
 0x266   :  { %2008 = vmatpush3.bf16.msra.mxu0 %v2189_v2 }
 0x267   :  { %2100 = vmatpush3.bf16.msra.mxu1 %v2487_v12 }
 0x268   :  { %2101 = vmatprep.subr.bf16.mxu1 %v2194_v57 }
 0x269   :  { %2010 = vmatmul.mubr.msk.bf16.vlgmr.msra.gmra.mrb[36].mxu0 %vm2643_vm7, %v2652_v45 }
 0x26a   :  { %2013 = vmatprep.mubr.msk.bf16.mxu0 %vm2195_vm0, %v2196_v11 }
 0x26b   :  { %2103 = vmatpush3.bf16.msra.mxu1 %v2497_v15 }
 0x271   :  { %2014 = vmatmul.mubr.msk.bf16.gmra.mrb[40].mxu0 %vm2674_vm9, %v1657_v0 }
 0x272   :  { %2017 = vmatprep.mubr.msk.bf16.mxu0 %vm2195_vm0, %v2196_v11 }
 0x279   :  { %2018 = vmatmul.mubr.msk.bf16.gmra.mrb[44].mxu0 %vm2701_vm10, %v1660_v9 }
 0x31c   :  { %v1012_v57 = vpop.f32.mrb[24].mxu0  ;;  %v1134_v5 = vpop.f32.mrb[16].mxu1 }
 0x31d   :  { %v1955_v8 = vpop.f32.mrb[25].mxu0  ;;  %v1983_v12 = vpop.f32.mrb[17].mxu1  ;;  %v1285_v14 = vrot.slane %v1134_v5, 1 }
 0x31e   :  { %v1015_v15 = vpop.f32.mrb[26].mxu0  ;;  %v1137_v13 = vpop.f32.mrb[18].mxu1 }
 0x31f   :  { %v1286_v17 = vrot.slane %v1137_v13, 1  ;;  %v1956_v18 = vpop.f32.mrb[27].mxu0  ;;  %v1984_v19 = vpop.f32.mrb[19].mxu1 }
 0x321   :  { %v1287_v20 = vsel %vm636_vm1, %v1285_v14, %v1286_v17 }
 0x322   :  { %v1301_v21 = vadd.f32 %v1287_v20, %v1012_v57 }
 0x324   :  { %v1020_v23 = vpop.f32.mrb[28].mxu0  ;;  %v1142_v24 = vpop.f32.mrb[20].mxu1 }
 0x325   :  { %v1288_v25 = vrot.slane %v1142_v24, 1  ;;  %v1959_v26 = vpop.f32.mrb[29].mxu0  ;;  %v1987_v27 = vpop.f32.mrb[21].mxu1 }
 0x326   :  { %v1023_v28 = vpop.f32.mrb[30].mxu0  ;;  %v1145_v11 = vpop.f32.mrb[22].mxu1 }
 0x327   :  { %v1289_v29 = vsel %vm636_vm1, %v1286_v17, %v1288_v25  ;;  %v1303_v30 = vadd.f32 %v1288_v25, %v1020_v23  ;;  %v1960_v31 = vpop.f32.mrb[31].mxu0  ;;  %v1988_v32 = vpop.f32.mrb[23].mxu1  ;;  %v1290_v37 = vrot.slane %v1145_v11, 1 }
 0x328   :  { %v1302_v33 = vadd.f32 %v1289_v29, %v1015_v15 }
 0x32c   :  { %v1028_v35 = vpop.f32.mrb[32].mxu0  ;;  %v1150_v36 = vpop.f32.mrb[24].mxu1 }
 0x32d   :  { %v1291_v38 = vrot.slane %v1150_v36, 1  ;;  %v1963_v39 = vpop.f32.mrb[33].mxu0  ;;  %v1991_v40 = vpop.f32.mrb[25].mxu1 }
 0x32e   :  { %v1031_v34 = vpop.f32.mrb[34].mxu0  ;;  %v1153_v41 = vpop.f32.mrb[26].mxu1 }
 0x32f   :  { %v1292_v48 = vsel %vm636_vm1, %v1290_v37, %v1291_v38  ;;  %v1293_v47 = vrot.slane %v1153_v41, 1  ;;  %v1964_v43 = vpop.f32.mrb[35].mxu0  ;;  %v1992_v51 = vpop.f32.mrb[27].mxu1 }
 0x330   :  { %v1304_v42 = vadd.f32 %v1292_v48, %v1023_v28 }
 0x331   :  { %v1294_v44 = vsel %vm636_vm1, %v1291_v38, %v1293_v47  ;;  %v1306_v45 = vadd.f32 %v1293_v47, %v1031_v34 }
 0x332   :  { %v1305_v46 = vadd.f32 %v1294_v44, %v1028_v35 }
 0x33c   :  { %v1256_v49 = vpop.f32.mrb[36].mxu0 }
 0x33d   :  { %v2011_v50 = vpop.f32.mrb[37].mxu0  ;;  %v1313_v59 = vrot.slane %v1256_v49, 2 }
 0x33e   :  { %v1259_v52 = vpop.f32.mrb[38].mxu0 }
 0x33f   :  { %v1314_v54 = vrot.slane %v1259_v52, 2  ;;  %v2012_v53 = vpop.f32.mrb[39].mxu0 }
 0x341   :  { %v1315_v55 = vsel %vm665_vm2, %v1313_v59, %v1314_v54 }
 0x342   :  { %v1329_v58 = vadd.f32 %v1315_v55, %v1301_v21 }
 0x344   :  { %v1264_v61 = vpop.f32.mrb[40].mxu0  ;;  %v2770_v15 = vadd.f32 %v1732_v7, %v1329_v58 }
 0x345   :  { %v1316_v62 = vrot.slane %v1264_v61, 2  ;;  %v2015_v0 = vpop.f32.mrb[41].mxu0 }
 0x346   :  { %v1267_v1 = vpop.f32.mrb[42].mxu0  ;;  %v1363_v24 = vmul.f32 %v2770_v15, %v2770_v15 }
 0x347   :  { %v1317_v3 = vsel %vm665_vm2, %v1314_v54, %v1316_v62  ;;  %v1331_v56 = vadd.f32 %v1316_v62, %v1303_v30  ;;  %v2016_v60 = vpop.f32.mrb[43].mxu0  ;;  %v1318_v9 = vrot.slane %v1267_v1, 2 }
 0x348   :  { %v1330_v4 = vadd.f32 %v1317_v3, %v1302_v33 }
 0x349   :  { %v2767_v57 = vadd.f32 %v1732_v7, %v1331_v56 }
 0x34a   :  { %v2772_v14 = vadd.f32 %v1732_v7, %v1330_v4 }
 0x34b   :  { %v1365_v21 = vmul.f32 %v2767_v57, %v2767_v57  ;;  %v1351_v27 = vsel %vm704_vm3, %v2767_v57, 0.0 }
 0x34c   :  { %v1272_v6 = vpop.f32.mrb[44].mxu0  ;;  %v1364_v28 = vmul.f32 %v2772_v14, %v2772_v14 }
 0x34d   :  { %v1319_v63 = vrot.slane %v1272_v6, 2  ;;  %v2019_v10 = vpop.f32.mrb[45].mxu0  ;;  %v1371_v35 = vsel %vm704_vm3, %v1365_v21, 0.0 }
 0x34e   :  { %v1275_v2 = vpop.f32.mrb[46].mxu0 }
 0x34f   :  { %v1320_v5 = vsel %vm665_vm2, %v1318_v9, %v1319_v63  ;;  %v1321_v8 = vrot.slane %v1275_v2, 2  ;;  %v2020_v12 = vpop.f32.mrb[47].mxu0  ;;  %v1347_v9 = vld [vmem:[%s2843_s7] sm:$0x1] }
 0x350   :  { %v1332_v13 = vadd.f32 %v1320_v5, %v1304_v42  ;;  %v1348_v2 = vld [vmem:[%s2844_s8] sm:$0x1] }
 0x351   :  { %v1322_v17 = vsel %vm665_vm2, %v1319_v63, %v1321_v8  ;;  %v1334_v18 = vadd.f32 %v1321_v8, %v1306_v45 }
 0x352   :  { %v2775_v19 = vadd.f32 %v1732_v7, %v1332_v13  ;;  %v1333_v20 = vadd.f32 %v1322_v17, %v1305_v46 }
 0x353   :  { %v2779_v23 = vadd.f32 %v1732_v7, %v1334_v18 }
 0x354   :  { %v1366_v25 = vmul.f32 %v2775_v19, %v2775_v19  ;;  %v1345_v26 = vadd.f32 %v1732_v7, %v1333_v20  ;;  %v1349_v30 = vadd.f32 %v2775_v19, %v2770_v15 }
 0x355   :  { %v1352_v11 = vsel %vm704_vm3, %v2779_v23, 0.0  ;;  %v1368_v29 = vmul.f32 %v2779_v23, %v2779_v23 }
 0x356   :  { %v1350_v31 = vadd.f32 %v1345_v26, %v2772_v14  ;;  %v1353_v32 = vadd.f32 %v1352_v11, %v1351_v27  ;;  %v1367_v33 = vmul.f32 %v1345_v26, %v1345_v26  ;;  %v1369_v36 = vadd.f32 %v1366_v25, %v1363_v24 }
 0x357   :  { %v1372_v37 = vsel %vm704_vm3, %v1368_v29, 0.0 }
 0x358   :  { %v1354_v38 = vadd.f32 %v1350_v31, %v1349_v30  ;;  %v1355_v39 = vsel %vm704_vm3, %v1353_v32, 0.0  ;;  %v1370_v40 = vadd.f32 %v1367_v33, %v1364_v28  ;;  %v1373_v34 = vadd.f32 %v1372_v37, %v1371_v35 }
 0x35a   :  { %v1356_v41 = vadd.f32 %v1355_v39, %v1354_v38  ;;  %v1374_v48 = vadd.f32 %v1370_v40, %v1369_v36  ;;  %v1375_v47 = vsel %vm704_vm3, %v1373_v34, 0.0 }
 0x35c   :  { %v1357_v43 = vrot.slane %v1356_v41, 4  ;;  %v1376_v51 = vadd.f32 %v1375_v47, %v1374_v48 }
 0x35e   :  { %v1358_v42 = vadd.f32 %v1357_v43, %v1356_v41  ;;  %v1377_v44 = vrot.slane %v1376_v51, 4 }
 0x360   :  { %v1359_v45 = vrot.slane %v1358_v42, 2  ;;  %v1378_v46 = vadd.f32 %v1377_v44, %v1376_v51 }
 0x362   :  { %v1360_v49 = vadd.f32 %v1359_v45, %v1358_v42  ;;  %v1379_v50 = vrot.slane %v1378_v46, 2 }
 0x364   :  { %v1361_v52 = vrot.slane %v1360_v49, 1  ;;  %v1380_v59 = vadd.f32 %v1379_v50, %v1378_v46 }
 0x366   :  { %v1381_v54 = vrot.slane %v1380_v59, 1  ;;  %v1362_v53 = vadd.f32 %v1361_v52, %v1360_v49 }
 0x368   :  { %v1382_v55 = vadd.f32 %v1381_v54, %v1380_v59 }
 0x36a   :  { %v1383_v58 = vsel %vm737_vm4, %v1362_v53, %v1382_v55 }
 0x36b   :  { %2054 = vmatmul.mubr.f32.vlgmr.msra.gmra.mrb[14].mxu1 %v1383_v58 }
 0x43e   :  { %v1450_v61 = vpop.f32.mrb[14].mxu1 }
 0x43f   :  { %v1454_v62 = vmul.f32 0.0015432099, %v1450_v61  ;;  %v2055_v0 = vpop.f32.mrb[15].mxu1 }
 0x441   :  { %v1455_v1 = vmul.f32 %v1454_v62, %v1454_v62 }
 0x443   :  { %v1457_v3 = vrot.slane %v1455_v1, 7 }
 0x445   :  { %v1459_v56 = vsub.f32 %v1454_v62, %v1457_v3 }
 0x447   :  { %v1460_v60 = vadd.f32 1e-05, %v1459_v56 }
 0x449   :  { %2192 = vrsqrt.f32 %v1460_v60 }
 0x453   :  { %v2193_v4 = vpop.eup %2192 }
 0x454   :  { %v1469_v6 = vrot.slane %v2193_v4, %v2616_v16 }
 0x456   :  { %v1470_v7 = vcombine.high %v1469_v6, %v1469_v6 }
 0x458   :  { %v1477_v63 = vrot.slane %v1470_v7, %v2616_v16 }
 0x45a   :  { %v1479_v10 = vmul.f32 %v1477_v63, %v1347_v9 }
 0x45c   :  { %v1480_v5 = vmul.f32 %v1479_v10, %v1454_v62  ;;  %v1486_v8 = vrot.slane %v1479_v10, %v2623_v22 }
 0x45e   :  { %v1481_v12 = vsub.f32 %v1348_v2, %v1480_v5  ;;  %v1488_v13 = vmul.f32 %v1486_v8, %v2770_v15  ;;  %v1489_v17 = vmul.f32 %v1486_v8, %v2772_v14  ;;  %v1490_v18 = vmul.f32 %v1486_v8, %v2767_v57 }
 0x45f   :  { %v1491_v20 = vmul.f32 %v1486_v8, %v2775_v19  ;;  %v1492_v16 = vmul.f32 %v1486_v8, %v1345_v26  ;;  %v1493_v24 = vmul.f32 %v1486_v8, %v2779_v23 }
 0x460   :  { %v1498_v21 = vrot.slane %v1481_v12, %v2623_v22 }
 0x462   :  { %v1500_v25 = vadd.f32 %v1498_v21, %v1488_v13  ;;  %v1501_v27 = vadd.f32 %v1498_v21, %v1489_v17  ;;  %v1502_v28 = vadd.f32 %v1498_v21, %v1490_v18  ;;  %v1503_v11 = vadd.f32 %v1498_v21, %v1491_v20 }
 0x463   :  { %v1504_v29 = vadd.f32 %v1498_v21, %v1492_v16  ;;  %v1505_v30 = vadd.f32 %v1498_v21, %v1493_v24 }
 0x464   :  { %v1506_v31 = vmax.f32 %v1500_v25, 0.0  ;;  %v1507_v32 = vmax.f32 %v1501_v27, 0.0  ;;  %v1508_v15 = vmax.f32 %v1502_v28, 0.0  ;;  %v1509_v33 = vmax.f32 %v1503_v11, 0.0 }
 0x465   :  { %v1510_v14 = vmax.f32 %v1504_v29, 0.0  ;;  %v1511_v35 = vmax.f32 %v1505_v30, 0.0 }
 0x466   :  { %1512 = vst [vmem:[%s2841_s10] sm:$0xff] %v1506_v31  ;;  %1513 = vst [vmem:[%s2841_s10 + $0x8] sm:$0xff] %v1507_v32 }
 0x467   :  { %1514 = vst [vmem:[%s2841_s10 + $0x10] sm:$0x3] %v1508_v15  ;;  %1515 = vst [vmem:[%s2841_s10 + $0x18] sm:$0xff] %v1509_v33 }
 0x468   :  { %1516 = vst [vmem:[%s2841_s10 + $0x20] sm:$0xff] %v1510_v14  ;;  %1517 = vst [vmem:[%s2841_s10 + $0x28] sm:$0x3] %v1511_v35 }

</bundles_post_ra>
